<compile_context>
chip_gen: v5e
topology: v5e:2x2
jax: 0.10.0
libtpu: 0.0.40
codegen_flags: <defaults>
</compile_context>

<pallas_src>
import functools
import math

import numpy as np
import jax
import jax.numpy as jnp
from jax.experimental import pallas as pl
from jax.experimental.pallas import tpu as pltpu


# ---------------------------------------------------------------------------
# Pallas kernel: one grid step == a block of `nb` batch elements, fully
# vectorized across the batch dimension.
# ---------------------------------------------------------------------------
def _cdanet_kernel(x_ref, w1t_ref, wspc_ref, wm_ref, o_ref, pad_ref,
                   *, conv_offsets, padl, bn_bias):
    nb, c, hwp = x_ref.shape
    c2 = c // 2

    # Zero-halo invariant: the halo columns of pad_ref implement the SAME-conv
    # zero padding for vertically out-of-range 7x7 taps.  They are never written
    # below, but we re-zero them every step (cheap: 2*nb*padl floats) so the
    # kernel stays correct when the grid axis is sharded across TensorCores.
    pad_ref[:, :padl] = jnp.zeros((nb, padl), jnp.float32)
    pad_ref[:, padl + hwp:] = jnp.zeros((nb, padl), jnp.float32)

    x = x_ref[...].astype(jnp.float32)                         # (nb, C, HWp)

    # ---------------- ChannelGate (vectorized over nb) ----------------
    # B1 == B2  =>  D2 == 0, so the E2 half of the gate is the constant
    # sigmoid(0) = 0.5 (applied to the lower C/2 channels in the epilogue).
    # conv1x1 -> global-avg-pool -> conv1d is linear; folded on the host into
    # one (C, C/2) matrix applied to the per-image spatial sum.
    xsum = jnp.sum(x, axis=2)                                  # (nb, C)
    e1 = jnp.dot(xsum, w1t_ref[...],
                 preferred_element_type=jnp.float32)           # (nb, C/2)
    sc_top = jax.nn.sigmoid(e1)[:, :, None]                    # (nb, C/2, 1)

    # ---------------- SpatialGate (vectorized over nb) ----------------
    # 1x1 conv C -> 1 (the channel-mean of a single channel is the identity),
    # done as broadcast-multiply + channel reduction (no transpose introduced;
    # this work hides under the block DMA).
    s = jnp.sum(x * wspc_ref[...], axis=1)                     # (nb, HWp)
    pad_ref[:, padl:padl + hwp] = s
    # 7x7 SAME conv (only compressed channel 0 is nonzero) as 49 shift+FMA taps
    # over (nb, HWp) slabs.  Each tap weight carries the folded BatchNorm scale
    # and the horizontal (left/right image edge) mask; vertical edges fall into
    # the zero halo / the zero tail of x at positions hw..hwp.
    conv = jnp.zeros((nb, hwp), jnp.float32)
    for t, d in enumerate(conv_offsets):                       # static 49-tap unroll
        conv = conv + wm_ref[t:t + 1, :] * pad_ref[:, padl + d: padl + d + hwp]
    # TODO(synk): BatchNorm2d folded in eval mode (running stats baked into the
    #             tap weights / bn_bias); train-mode batch stats not reproduced.
    sc_sp = jax.nn.sigmoid(conv + bn_bias)[:, None, :]         # (nb, 1, HWp)

    # -------- fused epilogue: out = x * (scale_ch + scale_sp) ----------
    o_ref[:, :c2, :] = (x[:, :c2, :] * (sc_top + sc_sp)).astype(o_ref.dtype)
    o_ref[:, c2:, :] = (x[:, c2:, :] * (0.5 + sc_sp)).astype(o_ref.dtype)


# ---------------------------------------------------------------------------
# Wrapper: host-side parameter folding + pallas_call.
# ---------------------------------------------------------------------------
def cdanet_forward(x_nchw, params):
    n, c, h, w = map(int, x_nchw.shape)
    assert c in (64, 128, 256, 512), "CDANet defines weights only for C in {64,128,256,512}"
    c2 = c // 2
    hw = h * w
    hwp = ((hw + 127) // 128) * 128              # lane-dense spatial axis
    padl = ((3 * w + 3 + 127) // 128) * 128      # halo >= max |tap offset| = 3*w+3
    dtype = x_nchw.dtype
    esize = dtype.itemsize

    w1 = params["w1"].astype(jnp.float32)        # (C/2, C)   1x1 conv
    w1d = params["w1d"].astype(jnp.float32)      # (k,)       channel conv1d (k=3 or 5)
    wsp = params["wsp"].astype(jnp.float32)      # (1, C)     SpatialGate 1x1 conv
    w7 = params["w7"].astype(jnp.float32)        # (2, 7, 7)  7x7 conv (in-ch 1 unused)
    bn_scale = float(params["bn_scale"])
    bn_bias = float(params["bn_bias"])

    # ---- ChannelGate folding: conv1d(avg_pool(conv1x1(x))) == w1_eff @ sum(x)/HW ----
    k = int(w1d.shape[0])
    pad = (k - 1) // 2
    idx = np.arange(c2)
    mats = []
    for t in range(k):
        j = idx + t - pad
        ok = (j >= 0) & (j < c2)
        m = np.zeros((c2, c2), np.float32)
        m[idx[ok], j[ok]] = 1.0
        mats.append(m)
    shift = jnp.asarray(np.stack(mats))                           # (k, C/2, C/2)
    a1d = jnp.einsum('t,tij->ij', w1d, shift)                     # banded conv1d matrix
    w1t = jnp.transpose((a1d @ w1) * (1.0 / hw))                  # (C, C/2), applied to sum(x)

    # ---- SpatialGate 1x1 conv as a column for the broadcast-multiply ----
    wspc = wsp.reshape(c, 1)                                      # (C, 1)

    # ---- SpatialGate 7x7 conv: per-tap weight * horizontal/edge mask (BN folded) ----
    q = np.arange(hwp)
    ow = q % w
    in_img = q < hw
    masks, offs = [], []
    for di in range(-3, 4):
        for dj in range(-3, 4):
            masks.append(((ow + dj >= 0) & (ow + dj < w) & in_img).astype(np.float32))
            offs.append(di * w + dj)
    wm = jnp.asarray(np.stack(masks)) * (bn_scale * w7[0].reshape(49, 1))   # (49, HWp)

    # ---- data layout: (N, C, HWp), native dtype, lane-dense spatial axis ----
    x_flat = x_nchw.reshape(n, c, hw)
    if hwp != hw:
        # TODO(synk): this zero-pad is an extra HBM pass; it also provides the
        #             zero tail that the vertical 7x7 boundary taps rely on.
        #             Inputs with H*W % 128 == 0 skip it entirely.
        x_flat = jnp.pad(x_flat, ((0, 0), (0, 0), (0, hwp - hw)))

    # ---- batch blocking: biggest block under a per-chip VMEM-derived cap, with
    #      nb dividing N (no host-side batch-pad pass). ----
    try:
        vmem_cap = int(pltpu.get_tpu_info().vmem_capacity_bytes)
    except Exception:
        vmem_cap = 64 << 20
    blk_cap = max(1 << 20, min(6 << 20, vmem_cap // 24))
    per_b = c * hwp * esize
    nb_max = max(1, min(n, blk_cap // max(1, per_b)))
    if vmem_cap <= (64 << 20) and n >= 2:
        # v7x-like chips (small per-TC VMEM, 2 TensorCores): keep >= 2 parallel steps.
        nb_max = min(nb_max, max(1, n // 2))
    nb = 1
    for cand in range(nb_max, 0, -1):
        if n % cand == 0:
            nb = cand
            break
    grid_n = n // nb

    # Explicit VMEM budget: double-buffered I/O + weights, scratch, and headroom
    # for the f32 upcast / broadcast temporaries inside the kernel body.
    in_bytes = nb * c * hwp * esize
    f32_blk = nb * c * hwp * 4
    wm_bytes = 49 * hwp * 4
    w_bytes = (c * c2 + c) * 4
    scratch_bytes = nb * (hwp + 2 * padl) * 4
    vmem_limit = (2 * (2 * in_bytes + wm_bytes + w_bytes) + scratch_bytes
                  + 5 * f32_blk + (8 << 20))
    vmem_limit = int(min(max(vmem_limit, 32 << 20), vmem_cap * 3 // 4))

    kernel = functools.partial(
        _cdanet_kernel, conv_offsets=tuple(offs), padl=padl, bn_bias=bn_bias)

    out_flat = pl.pallas_call(
        kernel,
        out_shape=jax.ShapeDtypeStruct((n, c, hwp), dtype),
        grid_spec=pltpu.PrefetchScalarGridSpec(
            num_scalar_prefetch=0,
            grid=(grid_n,),
            in_specs=[
                pl.BlockSpec((nb, c, hwp), lambda i: (i, 0, 0)),   # x block
                pl.BlockSpec((c, c2), lambda i: (0, 0)),           # folded ChannelGate matrix
                pl.BlockSpec((c, 1), lambda i: (0, 0)),            # SpatialGate 1x1 column
                pl.BlockSpec((49, hwp), lambda i: (0, 0)),         # 7x7 tap weights * masks
            ],
            out_specs=pl.BlockSpec((nb, c, hwp), lambda i: (i, 0, 0)),
            scratch_shapes=[pltpu.VMEM((nb, hwp + 2 * padl), jnp.float32)],
        ),
        compiler_params=pltpu.CompilerParams(
            dimension_semantics=("parallel",),
            vmem_limit_bytes=vmem_limit),
    )(x_flat, w1t, wspc, wm)

    out = out_flat if hwp == hw else out_flat[:, :, :hw]
    return out.reshape(n, c, h, w)


# ---------------------------------------------------------------------------
# Pure-JAX reference (mirrors the PyTorch forward) for a correctness check.
# ---------------------------------------------------------------------------
def _ref_conv1d(p, w1d):
    k = w1d.shape[0]
    pad = (k - 1) // 2
    pp = jnp.pad(p, ((0, 0), (pad, pad)))
    cols = [jnp.sum(pp[:, i:i + k] * w1d, axis=1) for i in range(p.shape[1])]
    return jnp.stack(cols, axis=1)


def _reference_forward(x4, w1, w1d, wsp, w7, bn_scale, bn_bias):
    b = jnp.einsum('oc,nchw->nohw', w1, x4)
    d1 = (b + b) / 2.0
    d2 = (b - b) / 2.0
    p1 = jnp.mean(d1, axis=(2, 3))
    p2 = jnp.mean(d2, axis=(2, 3))
    e1 = _ref_conv1d(p1, w1d)
    e2 = _ref_conv1d(p2, w1d)
    att = jnp.concatenate([e1, e2], axis=1)
    out_ch = x4 * jax.nn.sigmoid(att)[:, :, None, None]

    s = jnp.einsum('oc,nchw->nohw', wsp, x4)
    sd1 = (s + s) / 2.0
    sd2 = (s - s) / 2.0
    xc = jnp.concatenate([jnp.mean(sd1, axis=1, keepdims=True),
                          jnp.mean(sd2, axis=1, keepdims=True)], axis=1)
    conv = jax.lax.conv_general_dilated(
        xc, w7[None], window_strides=(1, 1), padding='SAME',
        dimension_numbers=('NCHW', 'OIHW', 'NCHW'))
    out_sp = x4 * jax.nn.sigmoid(conv * bn_scale + bn_bias)
    return out_ch + out_sp


# ---------------------------------------------------------------------------
if __name__ == "__main__":
    N, C, H, W = 2, 64, 16, 16      # smallest channel count CDANet supports
    C2 = C // 2

    key = jax.random.PRNGKey(0)
    kx, kw1, kw1d, kwsp, kw7 = jax.random.split(key, 5)

    x = jax.random.normal(kx, (N, C, H, W), jnp.float32)

    # Deterministic synthetic parameters (shapes match the module's __init__).
    w1 = jax.random.normal(kw1, (C2, C), jnp.float32) * (1.0 / math.sqrt(C))      # conv1 (C==64 branch)
    k1d = 3 if C == 64 else 5                                                      # conv5 (k=3) / conv6 (k=5)
    w1d = jax.random.normal(kw1d, (k1d,), jnp.float32) * 0.5
    wsp = jax.random.normal(kwsp, (1, C), jnp.float32) * (1.0 / math.sqrt(C))      # SpatialGate conv1
    w7 = jax.random.normal(kw7, (2, 7, 7), jnp.float32) * (1.0 / math.sqrt(2 * 49))

    # BatchNorm2d(1): eval mode with default-initialized affine/running stats.
    bn_gamma, bn_beta, bn_mean, bn_var, bn_eps = 1.0, 0.0, 0.0, 1.0, 1e-5
    bn_scale = bn_gamma / math.sqrt(bn_var + bn_eps)
    bn_bias = bn_beta - bn_mean * bn_scale

    params = dict(w1=w1, w1d=w1d, wsp=wsp, w7=w7, bn_scale=bn_scale, bn_bias=bn_bias)

    # f32 I/O path vs the pure-JAX reference of the PyTorch forward.
    out = jax.block_until_ready(cdanet_forward(x, params))
    ref = _reference_forward(x, w1, w1d, wsp, w7, bn_scale, bn_bias)
    np.testing.assert_allclose(np.asarray(out), np.asarray(ref), rtol=2e-4, atol=2e-4)

    # bf16 I/O path: x and out are streamed as bf16, gate math stays f32.
    xb = x.astype(jnp.bfloat16)
    out_b = jax.block_until_ready(cdanet_forward(xb, params))
    assert out_b.dtype == jnp.bfloat16
    ref_b = _reference_forward(xb.astype(jnp.float32), w1, w1d, wsp, w7, bn_scale, bn_bias)
    np.testing.assert_allclose(np.asarray(out_b.astype(jnp.float32)), np.asarray(ref_b),
                               rtol=5e-2, atol=5e-2)

    print("KERNEL_OK")
</pallas_src>

<mosaic_0001>
module attributes {stable_mosaic.version = 11 : i64} {
  func.func @_cdanet_kernel(%arg0: i32, %arg1: memref<1x64x256xf32, #tpu.memory_space<vmem>>, %arg2: memref<64x32xf32, #tpu.memory_space<vmem>>, %arg3: memref<64x1xf32, #tpu.memory_space<vmem>>, %arg4: memref<49x256xf32, #tpu.memory_space<vmem>>, %arg5: memref<1x64x256xf32, #tpu.memory_space<vmem>>, %arg6: memref<1x512xf32, #tpu.memory_space<vmem>>) attributes {dimension_semantics = [#tpu.dimension_semantics<parallel>], iteration_bounds = array<i64: 2>, scalar_prefetch = 0 : i64, scratch_operands = 1 : i64, tpu.core_type = #tpu.core_type<tc>, window_params = [{transform_indices = @transform_0, window_bounds = array<i64: 1, 64, 256>}, {pipeline_mode = #tpu.pipeline_mode<synchronous>, transform_indices = @transform_1, window_bounds = array<i64: 64, 32>}, {pipeline_mode = #tpu.pipeline_mode<synchronous>, transform_indices = @transform_2, window_bounds = array<i64: 64, 1>}, {pipeline_mode = #tpu.pipeline_mode<synchronous>, transform_indices = @transform_3, window_bounds = array<i64: 49, 256>}, {transform_indices = @transform_4, window_bounds = array<i64: 1, 64, 256>}]} {
    %cst = arith.constant 0.000000e+00 : f32
    %0 = vector.broadcast %cst : f32 to vector<1x128xf32>
    %c0 = arith.constant 0 : index
    %c0_0 = arith.constant 0 : index
    %1 = vector.load %arg6[%c0, %c0_0] : memref<1x512xf32, #tpu.memory_space<vmem>>, vector<1x128xf32>
    tpu.vector_store %arg6[%c0, %c0_0], %0 {strides = array<i32>} : memref<1x512xf32, #tpu.memory_space<vmem>>, vector<1x128xf32>,
    %cst_1 = arith.constant 0.000000e+00 : f32
    %2 = vector.broadcast %cst_1 : f32 to vector<1x128xf32>
    %c0_2 = arith.constant 0 : index
    %c384 = arith.constant 384 : index
    %3 = vector.load %arg6[%c0_2, %c384] : memref<1x512xf32, #tpu.memory_space<vmem>>, vector<1x128xf32>
    tpu.vector_store %arg6[%c0_2, %c384], %2 {strides = array<i32>} : memref<1x512xf32, #tpu.memory_space<vmem>>, vector<1x128xf32>,
    %c0_3 = arith.constant 0 : index
    %c0_4 = arith.constant 0 : index
    %c0_5 = arith.constant 0 : index
    %4 = vector.load %arg1[%c0_3, %c0_4, %c0_5] : memref<1x64x256xf32, #tpu.memory_space<vmem>>, vector<1x64x256xf32>
    %cst_6 = arith.constant dense<0.000000e+00> : vector<1x64xf32>
    %5 = vector.multi_reduction <add>, %4, %cst_6 [2] : vector<1x64x256xf32> to vector<1x64xf32>
    %c0_7 = arith.constant 0 : index
    %c0_8 = arith.constant 0 : index
    %6 = vector.load %arg2[%c0_7, %c0_8] : memref<64x32xf32, #tpu.memory_space<vmem>>, vector<64x32xf32>
    %cst_9 = arith.constant dense<0.000000e+00> : vector<1x32xf32>
    %7 = tpu.matmul %5, %6, %cst_9 {dimension_numbers = #tpu.dot_dimension_numbers<[1], [0], [0], [1], [0, 0, 1, 1], [], []>} : vector<1x64xf32>, vector<64x32xf32>, vector<1x32xf32> -> vector<1x32xf32>
    %8 = arith.negf %7 : vector<1x32xf32>
    %9 = math.exp %8 : vector<1x32xf32>
    %cst_10 = arith.constant 1.000000e+00 : f32
    %10 = vector.broadcast %cst_10 : f32 to vector<1x32xf32>
    %11 = arith.addf %10, %9 : vector<1x32xf32>
    %12 = arith.divf %10, %11 : vector<1x32xf32>
    %13 = vector.shape_cast %12 : vector<1x32xf32> to vector<1x32x1xf32>
    %c0_11 = arith.constant 0 : index
    %c0_12 = arith.constant 0 : index
    %14 = vector.load %arg3[%c0_11, %c0_12] : memref<64x1xf32, #tpu.memory_space<vmem>>, vector<64x1xf32>
    %15 = vector.shape_cast %14 : vector<64x1xf32> to vector<1x64x1xf32>
    %16 = vector.broadcast %15 : vector<1x64x1xf32> to vector<1x64x256xf32>
    %17 = arith.mulf %4, %16 : vector<1x64x256xf32>
    %cst_13 = arith.constant dense<0.000000e+00> : vector<1x256xf32>
    %18 = vector.multi_reduction <add>, %17, %cst_13 [1] : vector<1x64x256xf32> to vector<1x256xf32>
    %c0_14 = arith.constant 0 : index
    %c128 = arith.constant 128 : index
    %19 = vector.load %arg6[%c0_14, %c128] : memref<1x512xf32, #tpu.memory_space<vmem>>, vector<1x256xf32>
    tpu.vector_store %arg6[%c0_14, %c128], %18 {strides = array<i32>} : memref<1x512xf32, #tpu.memory_space<vmem>>, vector<1x256xf32>,
    %cst_15 = arith.constant 0.000000e+00 : f32
    %20 = vector.broadcast %cst_15 : f32 to vector<1x256xf32>
    %c0_16 = arith.constant 0 : index
    %c0_17 = arith.constant 0 : index
    %21 = vector.load %arg4[%c0_16, %c0_17] : memref<49x256xf32, #tpu.memory_space<vmem>>, vector<1x256xf32>
    %c0_18 = arith.constant 0 : index
    %c77 = arith.constant 77 : index
    %22 = vector.load %arg6[%c0_18, %c77] : memref<1x512xf32, #tpu.memory_space<vmem>>, vector<1x256xf32>
    %23 = arith.mulf %21, %22 : vector<1x256xf32>
    %24 = arith.addf %20, %23 : vector<1x256xf32>
    %c1 = arith.constant 1 : index
    %c0_19 = arith.constant 0 : index
    %25 = vector.load %arg4[%c1, %c0_19] : memref<49x256xf32, #tpu.memory_space<vmem>>, vector<1x256xf32>
    %c0_20 = arith.constant 0 : index
    %c78 = arith.constant 78 : index
    %26 = vector.load %arg6[%c0_20, %c78] : memref<1x512xf32, #tpu.memory_space<vmem>>, vector<1x256xf32>
    %27 = arith.mulf %25, %26 : vector<1x256xf32>
    %28 = arith.addf %24, %27 : vector<1x256xf32>
    %c2 = arith.constant 2 : index
    %c0_21 = arith.constant 0 : index
    %29 = vector.load %arg4[%c2, %c0_21] : memref<49x256xf32, #tpu.memory_space<vmem>>, vector<1x256xf32>
    %c0_22 = arith.constant 0 : index
    %c79 = arith.constant 79 : index
    %30 = vector.load %arg6[%c0_22, %c79] : memref<1x512xf32, #tpu.memory_space<vmem>>, vector<1x256xf32>
    %31 = arith.mulf %29, %30 : vector<1x256xf32>
    %32 = arith.addf %28, %31 : vector<1x256xf32>
    %c3 = arith.constant 3 : index
    %c0_23 = arith.constant 0 : index
    %33 = vector.load %arg4[%c3, %c0_23] : memref<49x256xf32, #tpu.memory_space<vmem>>, vector<1x256xf32>
    %c0_24 = arith.constant 0 : index
    %c80 = arith.constant 80 : index
    %34 = vector.load %arg6[%c0_24, %c80] : memref<1x512xf32, #tpu.memory_space<vmem>>, vector<1x256xf32>
    %35 = arith.mulf %33, %34 : vector<1x256xf32>
    %36 = arith.addf %32, %35 : vector<1x256xf32>
    %c4 = arith.constant 4 : index
    %c0_25 = arith.constant 0 : index
    %37 = vector.load %arg4[%c4, %c0_25] : memref<49x256xf32, #tpu.memory_space<vmem>>, vector<1x256xf32>
    %c0_26 = arith.constant 0 : index
    %c81 = arith.constant 81 : index
    %38 = vector.load %arg6[%c0_26, %c81] : memref<1x512xf32, #tpu.memory_space<vmem>>, vector<1x256xf32>
    %39 = arith.mulf %37, %38 : vector<1x256xf32>
    %40 = arith.addf %36, %39 : vector<1x256xf32>
    %c5 = arith.constant 5 : index
    %c0_27 = arith.constant 0 : index
    %41 = vector.load %arg4[%c5, %c0_27] : memref<49x256xf32, #tpu.memory_space<vmem>>, vector<1x256xf32>
    %c0_28 = arith.constant 0 : index
    %c82 = arith.constant 82 : index
    %42 = vector.load %arg6[%c0_28, %c82] : memref<1x512xf32, #tpu.memory_space<vmem>>, vector<1x256xf32>
    %43 = arith.mulf %41, %42 : vector<1x256xf32>
    %44 = arith.addf %40, %43 : vector<1x256xf32>
    %c6 = arith.constant 6 : index
    %c0_29 = arith.constant 0 : index
    %45 = vector.load %arg4[%c6, %c0_29] : memref<49x256xf32, #tpu.memory_space<vmem>>, vector<1x256xf32>
    %c0_30 = arith.constant 0 : index
    %c83 = arith.constant 83 : index
    %46 = vector.load %arg6[%c0_30, %c83] : memref<1x512xf32, #tpu.memory_space<vmem>>, vector<1x256xf32>
    %47 = arith.mulf %45, %46 : vector<1x256xf32>
    %48 = arith.addf %44, %47 : vector<1x256xf32>
    %c7 = arith.constant 7 : index
    %c0_31 = arith.constant 0 : index
    %49 = vector.load %arg4[%c7, %c0_31] : memref<49x256xf32, #tpu.memory_space<vmem>>, vector<1x256xf32>
    %c0_32 = arith.constant 0 : index
    %c93 = arith.constant 93 : index
    %50 = vector.load %arg6[%c0_32, %c93] : memref<1x512xf32, #tpu.memory_space<vmem>>, vector<1x256xf32>
    %51 = arith.mulf %49, %50 : vector<1x256xf32>
    %52 = arith.addf %48, %51 : vector<1x256xf32>
    %c8 = arith.constant 8 : index
    %c0_33 = arith.constant 0 : index
    %53 = vector.load %arg4[%c8, %c0_33] : memref<49x256xf32, #tpu.memory_space<vmem>>, vector<1x256xf32>
    %c0_34 = arith.constant 0 : index
    %c94 = arith.constant 94 : index
    %54 = vector.load %arg6[%c0_34, %c94] : memref<1x512xf32, #tpu.memory_space<vmem>>, vector<1x256xf32>
    %55 = arith.mulf %53, %54 : vector<1x256xf32>
    %56 = arith.addf %52, %55 : vector<1x256xf32>
    %c9 = arith.constant 9 : index
    %c0_35 = arith.constant 0 : index
    %57 = vector.load %arg4[%c9, %c0_35] : memref<49x256xf32, #tpu.memory_space<vmem>>, vector<1x256xf32>
    %c0_36 = arith.constant 0 : index
    %c95 = arith.constant 95 : index
    %58 = vector.load %arg6[%c0_36, %c95] : memref<1x512xf32, #tpu.memory_space<vmem>>, vector<1x256xf32>
    %59 = arith.mulf %57, %58 : vector<1x256xf32>
    %60 = arith.addf %56, %59 : vector<1x256xf32>
    %c10 = arith.constant 10 : index
    %c0_37 = arith.constant 0 : index
    %61 = vector.load %arg4[%c10, %c0_37] : memref<49x256xf32, #tpu.memory_space<vmem>>, vector<1x256xf32>
    %c0_38 = arith.constant 0 : index
    %c96 = arith.constant 96 : index
    %62 = vector.load %arg6[%c0_38, %c96] : memref<1x512xf32, #tpu.memory_space<vmem>>, vector<1x256xf32>
    %63 = arith.mulf %61, %62 : vector<1x256xf32>
    %64 = arith.addf %60, %63 : vector<1x256xf32>
    %c11 = arith.constant 11 : index
    %c0_39 = arith.constant 0 : index
    %65 = vector.load %arg4[%c11, %c0_39] : memref<49x256xf32, #tpu.memory_space<vmem>>, vector<1x256xf32>
    %c0_40 = arith.constant 0 : index
    %c97 = arith.constant 97 : index
    %66 = vector.load %arg6[%c0_40, %c97] : memref<1x512xf32, #tpu.memory_space<vmem>>, vector<1x256xf32>
    %67 = arith.mulf %65, %66 : vector<1x256xf32>
    %68 = arith.addf %64, %67 : vector<1x256xf32>
    %c12 = arith.constant 12 : index
    %c0_41 = arith.constant 0 : index
    %69 = vector.load %arg4[%c12, %c0_41] : memref<49x256xf32, #tpu.memory_space<vmem>>, vector<1x256xf32>
    %c0_42 = arith.constant 0 : index
    %c98 = arith.constant 98 : index
    %70 = vector.load %arg6[%c0_42, %c98] : memref<1x512xf32, #tpu.memory_space<vmem>>, vector<1x256xf32>
    %71 = arith.mulf %69, %70 : vector<1x256xf32>
    %72 = arith.addf %68, %71 : vector<1x256xf32>
    %c13 = arith.constant 13 : index
    %c0_43 = arith.constant 0 : index
    %73 = vector.load %arg4[%c13, %c0_43] : memref<49x256xf32, #tpu.memory_space<vmem>>, vector<1x256xf32>
    %c0_44 = arith.constant 0 : index
    %c99 = arith.constant 99 : index
    %74 = vector.load %arg6[%c0_44, %c99] : memref<1x512xf32, #tpu.memory_space<vmem>>, vector<1x256xf32>
    %75 = arith.mulf %73, %74 : vector<1x256xf32>
    %76 = arith.addf %72, %75 : vector<1x256xf32>
    %c14 = arith.constant 14 : index
    %c0_45 = arith.constant 0 : index
    %77 = vector.load %arg4[%c14, %c0_45] : memref<49x256xf32, #tpu.memory_space<vmem>>, vector<1x256xf32>
    %c0_46 = arith.constant 0 : index
    %c109 = arith.constant 109 : index
    %78 = vector.load %arg6[%c0_46, %c109] : memref<1x512xf32, #tpu.memory_space<vmem>>, vector<1x256xf32>
    %79 = arith.mulf %77, %78 : vector<1x256xf32>
    %80 = arith.addf %76, %79 : vector<1x256xf32>
    %c15 = arith.constant 15 : index
    %c0_47 = arith.constant 0 : index
    %81 = vector.load %arg4[%c15, %c0_47] : memref<49x256xf32, #tpu.memory_space<vmem>>, vector<1x256xf32>
    %c0_48 = arith.constant 0 : index
    %c110 = arith.constant 110 : index
    %82 = vector.load %arg6[%c0_48, %c110] : memref<1x512xf32, #tpu.memory_space<vmem>>, vector<1x256xf32>
    %83 = arith.mulf %81, %82 : vector<1x256xf32>
    %84 = arith.addf %80, %83 : vector<1x256xf32>
    %c16 = arith.constant 16 : index
    %c0_49 = arith.constant 0 : index
    %85 = vector.load %arg4[%c16, %c0_49] : memref<49x256xf32, #tpu.memory_space<vmem>>, vector<1x256xf32>
    %c0_50 = arith.constant 0 : index
    %c111 = arith.constant 111 : index
    %86 = vector.load %arg6[%c0_50, %c111] : memref<1x512xf32, #tpu.memory_space<vmem>>, vector<1x256xf32>
    %87 = arith.mulf %85, %86 : vector<1x256xf32>
    %88 = arith.addf %84, %87 : vector<1x256xf32>
    %c17 = arith.constant 17 : index
    %c0_51 = arith.constant 0 : index
    %89 = vector.load %arg4[%c17, %c0_51] : memref<49x256xf32, #tpu.memory_space<vmem>>, vector<1x256xf32>
    %c0_52 = arith.constant 0 : index
    %c112 = arith.constant 112 : index
    %90 = vector.load %arg6[%c0_52, %c112] : memref<1x512xf32, #tpu.memory_space<vmem>>, vector<1x256xf32>
    %91 = arith.mulf %89, %90 : vector<1x256xf32>
    %92 = arith.addf %88, %91 : vector<1x256xf32>
    %c18 = arith.constant 18 : index
    %c0_53 = arith.constant 0 : index
    %93 = vector.load %arg4[%c18, %c0_53] : memref<49x256xf32, #tpu.memory_space<vmem>>, vector<1x256xf32>
    %c0_54 = arith.constant 0 : index
    %c113 = arith.constant 113 : index
    %94 = vector.load %arg6[%c0_54, %c113] : memref<1x512xf32, #tpu.memory_space<vmem>>, vector<1x256xf32>
    %95 = arith.mulf %93, %94 : vector<1x256xf32>
    %96 = arith.addf %92, %95 : vector<1x256xf32>
    %c19 = arith.constant 19 : index
    %c0_55 = arith.constant 0 : index
    %97 = vector.load %arg4[%c19, %c0_55] : memref<49x256xf32, #tpu.memory_space<vmem>>, vector<1x256xf32>
    %c0_56 = arith.constant 0 : index
    %c114 = arith.constant 114 : index
    %98 = vector.load %arg6[%c0_56, %c114] : memref<1x512xf32, #tpu.memory_space<vmem>>, vector<1x256xf32>
    %99 = arith.mulf %97, %98 : vector<1x256xf32>
    %100 = arith.addf %96, %99 : vector<1x256xf32>
    %c20 = arith.constant 20 : index
    %c0_57 = arith.constant 0 : index
    %101 = vector.load %arg4[%c20, %c0_57] : memref<49x256xf32, #tpu.memory_space<vmem>>, vector<1x256xf32>
    %c0_58 = arith.constant 0 : index
    %c115 = arith.constant 115 : index
    %102 = vector.load %arg6[%c0_58, %c115] : memref<1x512xf32, #tpu.memory_space<vmem>>, vector<1x256xf32>
    %103 = arith.mulf %101, %102 : vector<1x256xf32>
    %104 = arith.addf %100, %103 : vector<1x256xf32>
    %c21 = arith.constant 21 : index
    %c0_59 = arith.constant 0 : index
    %105 = vector.load %arg4[%c21, %c0_59] : memref<49x256xf32, #tpu.memory_space<vmem>>, vector<1x256xf32>
    %c0_60 = arith.constant 0 : index
    %c125 = arith.constant 125 : index
    %106 = vector.load %arg6[%c0_60, %c125] : memref<1x512xf32, #tpu.memory_space<vmem>>, vector<1x256xf32>
    %107 = arith.mulf %105, %106 : vector<1x256xf32>
    %108 = arith.addf %104, %107 : vector<1x256xf32>
    %c22 = arith.constant 22 : index
    %c0_61 = arith.constant 0 : index
    %109 = vector.load %arg4[%c22, %c0_61] : memref<49x256xf32, #tpu.memory_space<vmem>>, vector<1x256xf32>
    %c0_62 = arith.constant 0 : index
    %c126 = arith.constant 126 : index
    %110 = vector.load %arg6[%c0_62, %c126] : memref<1x512xf32, #tpu.memory_space<vmem>>, vector<1x256xf32>
    %111 = arith.mulf %109, %110 : vector<1x256xf32>
    %112 = arith.addf %108, %111 : vector<1x256xf32>
    %c23 = arith.constant 23 : index
    %c0_63 = arith.constant 0 : index
    %113 = vector.load %arg4[%c23, %c0_63] : memref<49x256xf32, #tpu.memory_space<vmem>>, vector<1x256xf32>
    %c0_64 = arith.constant 0 : index
    %c127 = arith.constant 127 : index
    %114 = vector.load %arg6[%c0_64, %c127] : memref<1x512xf32, #tpu.memory_space<vmem>>, vector<1x256xf32>
    %115 = arith.mulf %113, %114 : vector<1x256xf32>
    %116 = arith.addf %112, %115 : vector<1x256xf32>
    %c24 = arith.constant 24 : index
    %c0_65 = arith.constant 0 : index
    %117 = vector.load %arg4[%c24, %c0_65] : memref<49x256xf32, #tpu.memory_space<vmem>>, vector<1x256xf32>
    %c0_66 = arith.constant 0 : index
    %c128_67 = arith.constant 128 : index
    %118 = vector.load %arg6[%c0_66, %c128_67] : memref<1x512xf32, #tpu.memory_space<vmem>>, vector<1x256xf32>
    %119 = arith.mulf %117, %118 : vector<1x256xf32>
    %120 = arith.addf %116, %119 : vector<1x256xf32>
    %c25 = arith.constant 25 : index
    %c0_68 = arith.constant 0 : index
    %121 = vector.load %arg4[%c25, %c0_68] : memref<49x256xf32, #tpu.memory_space<vmem>>, vector<1x256xf32>
    %c0_69 = arith.constant 0 : index
    %c129 = arith.constant 129 : index
    %122 = vector.load %arg6[%c0_69, %c129] : memref<1x512xf32, #tpu.memory_space<vmem>>, vector<1x256xf32>
    %123 = arith.mulf %121, %122 : vector<1x256xf32>
    %124 = arith.addf %120, %123 : vector<1x256xf32>
    %c26 = arith.constant 26 : index
    %c0_70 = arith.constant 0 : index
    %125 = vector.load %arg4[%c26, %c0_70] : memref<49x256xf32, #tpu.memory_space<vmem>>, vector<1x256xf32>
    %c0_71 = arith.constant 0 : index
    %c130 = arith.constant 130 : index
    %126 = vector.load %arg6[%c0_71, %c130] : memref<1x512xf32, #tpu.memory_space<vmem>>, vector<1x256xf32>
    %127 = arith.mulf %125, %126 : vector<1x256xf32>
    %128 = arith.addf %124, %127 : vector<1x256xf32>
    %c27 = arith.constant 27 : index
    %c0_72 = arith.constant 0 : index
    %129 = vector.load %arg4[%c27, %c0_72] : memref<49x256xf32, #tpu.memory_space<vmem>>, vector<1x256xf32>
    %c0_73 = arith.constant 0 : index
    %c131 = arith.constant 131 : index
    %130 = vector.load %arg6[%c0_73, %c131] : memref<1x512xf32, #tpu.memory_space<vmem>>, vector<1x256xf32>
    %131 = arith.mulf %129, %130 : vector<1x256xf32>
    %132 = arith.addf %128, %131 : vector<1x256xf32>
    %c28 = arith.constant 28 : index
    %c0_74 = arith.constant 0 : index
    %133 = vector.load %arg4[%c28, %c0_74] : memref<49x256xf32, #tpu.memory_space<vmem>>, vector<1x256xf32>
    %c0_75 = arith.constant 0 : index
    %c141 = arith.constant 141 : index
    %134 = vector.load %arg6[%c0_75, %c141] : memref<1x512xf32, #tpu.memory_space<vmem>>, vector<1x256xf32>
    %135 = arith.mulf %133, %134 : vector<1x256xf32>
    %136 = arith.addf %132, %135 : vector<1x256xf32>
    %c29 = arith.constant 29 : index
    %c0_76 = arith.constant 0 : index
    %137 = vector.load %arg4[%c29, %c0_76] : memref<49x256xf32, #tpu.memory_space<vmem>>, vector<1x256xf32>
    %c0_77 = arith.constant 0 : index
    %c142 = arith.constant 142 : index
    %138 = vector.load %arg6[%c0_77, %c142] : memref<1x512xf32, #tpu.memory_space<vmem>>, vector<1x256xf32>
    %139 = arith.mulf %137, %138 : vector<1x256xf32>
    %140 = arith.addf %136, %139 : vector<1x256xf32>
    %c30 = arith.constant 30 : index
    %c0_78 = arith.constant 0 : index
    %141 = vector.load %arg4[%c30, %c0_78] : memref<49x256xf32, #tpu.memory_space<vmem>>, vector<1x256xf32>
    %c0_79 = arith.constant 0 : index
    %c143 = arith.constant 143 : index
    %142 = vector.load %arg6[%c0_79, %c143] : memref<1x512xf32, #tpu.memory_space<vmem>>, vector<1x256xf32>
    %143 = arith.mulf %141, %142 : vector<1x256xf32>
    %144 = arith.addf %140, %143 : vector<1x256xf32>
    %c31 = arith.constant 31 : index
    %c0_80 = arith.constant 0 : index
    %145 = vector.load %arg4[%c31, %c0_80] : memref<49x256xf32, #tpu.memory_space<vmem>>, vector<1x256xf32>
    %c0_81 = arith.constant 0 : index
    %c144 = arith.constant 144 : index
    %146 = vector.load %arg6[%c0_81, %c144] : memref<1x512xf32, #tpu.memory_space<vmem>>, vector<1x256xf32>
    %147 = arith.mulf %145, %146 : vector<1x256xf32>
    %148 = arith.addf %144, %147 : vector<1x256xf32>
    %c32 = arith.constant 32 : index
    %c0_82 = arith.constant 0 : index
    %149 = vector.load %arg4[%c32, %c0_82] : memref<49x256xf32, #tpu.memory_space<vmem>>, vector<1x256xf32>
    %c0_83 = arith.constant 0 : index
    %c145 = arith.constant 145 : index
    %150 = vector.load %arg6[%c0_83, %c145] : memref<1x512xf32, #tpu.memory_space<vmem>>, vector<1x256xf32>
    %151 = arith.mulf %149, %150 : vector<1x256xf32>
    %152 = arith.addf %148, %151 : vector<1x256xf32>
    %c33 = arith.constant 33 : index
    %c0_84 = arith.constant 0 : index
    %153 = vector.load %arg4[%c33, %c0_84] : memref<49x256xf32, #tpu.memory_space<vmem>>, vector<1x256xf32>
    %c0_85 = arith.constant 0 : index
    %c146 = arith.constant 146 : index
    %154 = vector.load %arg6[%c0_85, %c146] : memref<1x512xf32, #tpu.memory_space<vmem>>, vector<1x256xf32>
    %155 = arith.mulf %153, %154 : vector<1x256xf32>
    %156 = arith.addf %152, %155 : vector<1x256xf32>
    %c34 = arith.constant 34 : index
    %c0_86 = arith.constant 0 : index
    %157 = vector.load %arg4[%c34, %c0_86] : memref<49x256xf32, #tpu.memory_space<vmem>>, vector<1x256xf32>
    %c0_87 = arith.constant 0 : index
    %c147 = arith.constant 147 : index
    %158 = vector.load %arg6[%c0_87, %c147] : memref<1x512xf32, #tpu.memory_space<vmem>>, vector<1x256xf32>
    %159 = arith.mulf %157, %158 : vector<1x256xf32>
    %160 = arith.addf %156, %159 : vector<1x256xf32>
    %c35 = arith.constant 35 : index
    %c0_88 = arith.constant 0 : index
    %161 = vector.load %arg4[%c35, %c0_88] : memref<49x256xf32, #tpu.memory_space<vmem>>, vector<1x256xf32>
    %c0_89 = arith.constant 0 : index
    %c157 = arith.constant 157 : index
    %162 = vector.load %arg6[%c0_89, %c157] : memref<1x512xf32, #tpu.memory_space<vmem>>, vector<1x256xf32>
    %163 = arith.mulf %161, %162 : vector<1x256xf32>
    %164 = arith.addf %160, %163 : vector<1x256xf32>
    %c36 = arith.constant 36 : index
    %c0_90 = arith.constant 0 : index
    %165 = vector.load %arg4[%c36, %c0_90] : memref<49x256xf32, #tpu.memory_space<vmem>>, vector<1x256xf32>
    %c0_91 = arith.constant 0 : index
    %c158 = arith.constant 158 : index
    %166 = vector.load %arg6[%c0_91, %c158] : memref<1x512xf32, #tpu.memory_space<vmem>>, vector<1x256xf32>
    %167 = arith.mulf %165, %166 : vector<1x256xf32>
    %168 = arith.addf %164, %167 : vector<1x256xf32>
    %c37 = arith.constant 37 : index
    %c0_92 = arith.constant 0 : index
    %169 = vector.load %arg4[%c37, %c0_92] : memref<49x256xf32, #tpu.memory_space<vmem>>, vector<1x256xf32>
    %c0_93 = arith.constant 0 : index
    %c159 = arith.constant 159 : index
    %170 = vector.load %arg6[%c0_93, %c159] : memref<1x512xf32, #tpu.memory_space<vmem>>, vector<1x256xf32>
    %171 = arith.mulf %169, %170 : vector<1x256xf32>
    %172 = arith.addf %168, %171 : vector<1x256xf32>
    %c38 = arith.constant 38 : index
    %c0_94 = arith.constant 0 : index
    %173 = vector.load %arg4[%c38, %c0_94] : memref<49x256xf32, #tpu.memory_space<vmem>>, vector<1x256xf32>
    %c0_95 = arith.constant 0 : index
    %c160 = arith.constant 160 : index
    %174 = vector.load %arg6[%c0_95, %c160] : memref<1x512xf32, #tpu.memory_space<vmem>>, vector<1x256xf32>
    %175 = arith.mulf %173, %174 : vector<1x256xf32>
    %176 = arith.addf %172, %175 : vector<1x256xf32>
    %c39 = arith.constant 39 : index
    %c0_96 = arith.constant 0 : index
    %177 = vector.load %arg4[%c39, %c0_96] : memref<49x256xf32, #tpu.memory_space<vmem>>, vector<1x256xf32>
    %c0_97 = arith.constant 0 : index
    %c161 = arith.constant 161 : index
    %178 = vector.load %arg6[%c0_97, %c161] : memref<1x512xf32, #tpu.memory_space<vmem>>, vector<1x256xf32>
    %179 = arith.mulf %177, %178 : vector<1x256xf32>
    %180 = arith.addf %176, %179 : vector<1x256xf32>
    %c40 = arith.constant 40 : index
    %c0_98 = arith.constant 0 : index
    %181 = vector.load %arg4[%c40, %c0_98] : memref<49x256xf32, #tpu.memory_space<vmem>>, vector<1x256xf32>
    %c0_99 = arith.constant 0 : index
    %c162 = arith.constant 162 : index
    %182 = vector.load %arg6[%c0_99, %c162] : memref<1x512xf32, #tpu.memory_space<vmem>>, vector<1x256xf32>
    %183 = arith.mulf %181, %182 : vector<1x256xf32>
    %184 = arith.addf %180, %183 : vector<1x256xf32>
    %c41 = arith.constant 41 : index
    %c0_100 = arith.constant 0 : index
    %185 = vector.load %arg4[%c41, %c0_100] : memref<49x256xf32, #tpu.memory_space<vmem>>, vector<1x256xf32>
    %c0_101 = arith.constant 0 : index
    %c163 = arith.constant 163 : index
    %186 = vector.load %arg6[%c0_101, %c163] : memref<1x512xf32, #tpu.memory_space<vmem>>, vector<1x256xf32>
    %187 = arith.mulf %185, %186 : vector<1x256xf32>
    %188 = arith.addf %184, %187 : vector<1x256xf32>
    %c42 = arith.constant 42 : index
    %c0_102 = arith.constant 0 : index
    %189 = vector.load %arg4[%c42, %c0_102] : memref<49x256xf32, #tpu.memory_space<vmem>>, vector<1x256xf32>
    %c0_103 = arith.constant 0 : index
    %c173 = arith.constant 173 : index
    %190 = vector.load %arg6[%c0_103, %c173] : memref<1x512xf32, #tpu.memory_space<vmem>>, vector<1x256xf32>
    %191 = arith.mulf %189, %190 : vector<1x256xf32>
    %192 = arith.addf %188, %191 : vector<1x256xf32>
    %c43 = arith.constant 43 : index
    %c0_104 = arith.constant 0 : index
    %193 = vector.load %arg4[%c43, %c0_104] : memref<49x256xf32, #tpu.memory_space<vmem>>, vector<1x256xf32>
    %c0_105 = arith.constant 0 : index
    %c174 = arith.constant 174 : index
    %194 = vector.load %arg6[%c0_105, %c174] : memref<1x512xf32, #tpu.memory_space<vmem>>, vector<1x256xf32>
    %195 = arith.mulf %193, %194 : vector<1x256xf32>
    %196 = arith.addf %192, %195 : vector<1x256xf32>
    %c44 = arith.constant 44 : index
    %c0_106 = arith.constant 0 : index
    %197 = vector.load %arg4[%c44, %c0_106] : memref<49x256xf32, #tpu.memory_space<vmem>>, vector<1x256xf32>
    %c0_107 = arith.constant 0 : index
    %c175 = arith.constant 175 : index
    %198 = vector.load %arg6[%c0_107, %c175] : memref<1x512xf32, #tpu.memory_space<vmem>>, vector<1x256xf32>
    %199 = arith.mulf %197, %198 : vector<1x256xf32>
    %200 = arith.addf %196, %199 : vector<1x256xf32>
    %c45 = arith.constant 45 : index
    %c0_108 = arith.constant 0 : index
    %201 = vector.load %arg4[%c45, %c0_108] : memref<49x256xf32, #tpu.memory_space<vmem>>, vector<1x256xf32>
    %c0_109 = arith.constant 0 : index
    %c176 = arith.constant 176 : index
    %202 = vector.load %arg6[%c0_109, %c176] : memref<1x512xf32, #tpu.memory_space<vmem>>, vector<1x256xf32>
    %203 = arith.mulf %201, %202 : vector<1x256xf32>
    %204 = arith.addf %200, %203 : vector<1x256xf32>
    %c46 = arith.constant 46 : index
    %c0_110 = arith.constant 0 : index
    %205 = vector.load %arg4[%c46, %c0_110] : memref<49x256xf32, #tpu.memory_space<vmem>>, vector<1x256xf32>
    %c0_111 = arith.constant 0 : index
    %c177 = arith.constant 177 : index
    %206 = vector.load %arg6[%c0_111, %c177] : memref<1x512xf32, #tpu.memory_space<vmem>>, vector<1x256xf32>
    %207 = arith.mulf %205, %206 : vector<1x256xf32>
    %208 = arith.addf %204, %207 : vector<1x256xf32>
    %c47 = arith.constant 47 : index
    %c0_112 = arith.constant 0 : index
    %209 = vector.load %arg4[%c47, %c0_112] : memref<49x256xf32, #tpu.memory_space<vmem>>, vector<1x256xf32>
    %c0_113 = arith.constant 0 : index
    %c178 = arith.constant 178 : index
    %210 = vector.load %arg6[%c0_113, %c178] : memref<1x512xf32, #tpu.memory_space<vmem>>, vector<1x256xf32>
    %211 = arith.mulf %209, %210 : vector<1x256xf32>
    %212 = arith.addf %208, %211 : vector<1x256xf32>
    %c48 = arith.constant 48 : index
    %c0_114 = arith.constant 0 : index
    %213 = vector.load %arg4[%c48, %c0_114] : memref<49x256xf32, #tpu.memory_space<vmem>>, vector<1x256xf32>
    %c0_115 = arith.constant 0 : index
    %c179 = arith.constant 179 : index
    %214 = vector.load %arg6[%c0_115, %c179] : memref<1x512xf32, #tpu.memory_space<vmem>>, vector<1x256xf32>
    %215 = arith.mulf %213, %214 : vector<1x256xf32>
    %216 = arith.addf %212, %215 : vector<1x256xf32>
    %cst_116 = arith.constant 0.000000e+00 : f32
    %217 = vector.broadcast %cst_116 : f32 to vector<1x256xf32>
    %218 = arith.addf %216, %217 : vector<1x256xf32>
    %219 = arith.negf %218 : vector<1x256xf32>
    %220 = math.exp %219 : vector<1x256xf32>
    %cst_117 = arith.constant 1.000000e+00 : f32
    %221 = vector.broadcast %cst_117 : f32 to vector<1x256xf32>
    %222 = arith.addf %221, %220 : vector<1x256xf32>
    %223 = arith.divf %221, %222 : vector<1x256xf32>
    %224 = vector.shape_cast %223 : vector<1x256xf32> to vector<1x1x256xf32>
    %225 = vector.extract_strided_slice %4 {offsets = [0, 0, 0], sizes = [1, 32, 256], strides = [1, 1, 1]} : vector<1x64x256xf32> to vector<1x32x256xf32>
    %226 = vector.broadcast %13 : vector<1x32x1xf32> to vector<1x32x256xf32>
    %227 = vector.broadcast %224 : vector<1x1x256xf32> to vector<1x32x256xf32>
    %228 = arith.addf %226, %227 : vector<1x32x256xf32>
    %229 = arith.mulf %225, %228 : vector<1x32x256xf32>
    %c0_118 = arith.constant 0 : index
    %c0_119 = arith.constant 0 : index
    %c0_120 = arith.constant 0 : index
    %230 = vector.load %arg5[%c0_118, %c0_119, %c0_120] : memref<1x64x256xf32, #tpu.memory_space<vmem>>, vector<1x32x256xf32>
    tpu.vector_store %arg5[%c0_118, %c0_119, %c0_120], %229 {strides = array<i32>} : memref<1x64x256xf32, #tpu.memory_space<vmem>>, vector<1x32x256xf32>,
    %231 = vector.extract_strided_slice %4 {offsets = [0, 32, 0], sizes = [1, 32, 256], strides = [1, 1, 1]} : vector<1x64x256xf32> to vector<1x32x256xf32>
    %cst_121 = arith.constant 5.000000e-01 : f32
    %232 = vector.broadcast %cst_121 : f32 to vector<1x1x256xf32>
    %233 = arith.addf %232, %224 : vector<1x1x256xf32>
    %234 = vector.broadcast %233 : vector<1x1x256xf32> to vector<1x32x256xf32>
    %235 = arith.mulf %231, %234 : vector<1x32x256xf32>
    %c0_122 = arith.constant 0 : index
    %c32_123 = arith.constant 32 : index
    %c0_124 = arith.constant 0 : index
    %236 = vector.load %arg5[%c0_122, %c32_123, %c0_124] : memref<1x64x256xf32, #tpu.memory_space<vmem>>, vector<1x32x256xf32>
    tpu.vector_store %arg5[%c0_122, %c32_123, %c0_124], %235 {strides = array<i32>} : memref<1x64x256xf32, #tpu.memory_space<vmem>>, vector<1x32x256xf32>,
    return
  }
  func.func @transform_0(%arg0: i32) -> (i32, i32, i32) {
    %c0_i32 = arith.constant 0 : i32
    %c0_i32_0 = arith.constant 0 : i32
    %c0_i32_1 = arith.constant 0 : i32
    return %arg0, %c0_i32, %c0_i32_0 : i32, i32, i32
  }
  func.func @transform_1(%arg0: i32) -> (i32, i32) {
    %c0_i32 = arith.constant 0 : i32
    %c0_i32_0 = arith.constant 0 : i32
    %c0_i32_1 = arith.constant 0 : i32
    return %c0_i32, %c0_i32_0 : i32, i32
  }
  func.func @transform_2(%arg0: i32) -> (i32, i32) {
    %c0_i32 = arith.constant 0 : i32
    %c0_i32_0 = arith.constant 0 : i32
    %c0_i32_1 = arith.constant 0 : i32
    return %c0_i32, %c0_i32_0 : i32, i32
  }
  func.func @transform_3(%arg0: i32) -> (i32, i32) {
    %c0_i32 = arith.constant 0 : i32
    %c0_i32_0 = arith.constant 0 : i32
    %c0_i32_1 = arith.constant 0 : i32
    return %c0_i32, %c0_i32_0 : i32, i32
  }
  func.func @transform_4(%arg0: i32) -> (i32, i32, i32) {
    %c0_i32 = arith.constant 0 : i32
    %c0_i32_0 = arith.constant 0 : i32
    %c0_i32_1 = arith.constant 0 : i32
    return %arg0, %c0_i32, %c0_i32_0 : i32, i32, i32
  }
}

</mosaic_0001>

<bundles_post_ra>
// kernel: tpu_custom_call.1
= control target key start
LH: loop header
LB: loop body
LE: loop exit
PB: predicated region body
PF: predicated region fallthrough
CT: control target
= control target key end

     0   :  { %9 = vsyncpa [#allocation4], 0  ;;  %s2028_s0 = inlined_call_operand.hbm [shape: f32[2,64,256], index: 0, kind: input, shape index: {}]   ;;  %s2029_s1 = inlined_call_operand.vmem [shape: f32[64,32], index: 1, kind: input, shape index: {}]   ;;  %s2030_s2 = inlined_call_operand.vmem [shape: f32[64,1], index: 2, kind: input, shape index: {}]   ;;  %s2031_s3 = inlined_call_operand.vmem [shape: f32[49,256], index: 3, kind: input, shape index: {}]   ;;  %s2032_s4 = inlined_call_operand.hbm [shape: f32[2,64,256], index: 4, kind: output, shape index: {}]  }
   0x1   :  { %11 = vsyncpa [#allocation4 + $0x1], 0 }
   0x2   :  { %12 = vsyncpa [#allocation5], 0 }
   0x3   :  { %14 = vsyncpa [#allocation5 + $0x1], 0  ;;  %s1499_s15 = smov 0   ;;  %s1501_s16 = smov 0  }
   0x4   :  { %s1503_s17 = smov 0   ;;  %s1505_s18 = smov 0  }
   0x5 LB: > { %s1520_s19 = sadd.s32 4294967295, %s1419_s18   ;;  %s1125_s20 = sadd.s32 4294967294, %s1419_s18   ;;  %s1419_s18 = sphi %s1505_s18, %s2042_s18   ;;  %s1415_s17 = sphi %s1503_s17, %s2041_s17   ;;  %s1411_s16 = sphi %s1501_s16, %s2040_s16   ;;  %s1407_s15 = sphi %s1499_s15, %s2039_s15  }
   0x6   : > { %s1524_s21 = sadd.s32 1, %s1419_s18   ;;  %s27_s22 = sadd.s32 1, %s1415_s17 }
   0x7   : > { %s24_s23 = ssub.s32 %s1419_s18, %s1524_s21  ;;  %p34_p0 = scmp.ne.s32.totalorder %s1415_s17, %s1411_s16 }
   0x8   : > { %p25_p1 = scmp.eq.s32.totalorder %s24_s23, 0  ;;  %p35_p2 = scmp.eq.s32.totalorder %s1419_s18, 0 }
   0x9   : > { %p40_p3 = scmp.ne.s32.totalorder %s1411_s16, %s1407_s15  ;;  %p41_p4 = scmp.eq.s32.totalorder %s1520_s19, 0 }
   0xa   : > { %s1536_s24 = scalar_select %p25_p1, %s1415_s17, %s27_s22  }
   0xb   : > { %p1538_p5 = por %p35_p2, %p34_p0  ;;  %p1542_p6 = por %p41_p4, %p40_p3 }
   0xc   : > { %p127_p7 = scmp.eq.s32.totalorder %s1520_s19, 1  ;;  %p133_p8 = scmp.eq.s32.totalorder %s1125_s20, 1 }
   0xd   : > { %p1204_p10 = scmp.lt.s32.totalorder %s1419_s18, 2  ;;  %s162_s29 = sand.u32 1, %s1415_s17  }
   0xe   : > { %p1549_p11 = por %p127_p7, %p34_p0  ;;  %p1553_p12 = por %p133_p8, %p40_p3 }
   0xf   : > { %s1190_s30 = sshll.u32 %s1419_s18, 7  ;;  %s1128_s5 = sshll.u32 %s162_s29, 7 }
  0x10   : > { %s171_s8 = scalar_lea.hbm %s2028_s0, %s1190_s30  ;;  %s166_s10 = scalar_lea.vmem [#allocation3], %s1128_s5 }
  0x11   : > { %s172_s9 = sshll.u32 %s171_s8, 4  ;;  %s174_s11 = sshll.u32 %s166_s10, 4  ;;  %s173_s9 = int_to_ptr.hbm [resolvable:$true] %s172_s9  ;;  %s175_s11 = int_to_ptr.vmem [resolvable:$true] %s174_s11 }
  0x12   : > { %p1564_p13 = pnand %p1204_p10, %p1538_p5  ;;  %p1131_p0 = scmp.ge.s32.totalorder %s1419_s18, 1 }
  0x13   : > { %p182_p1 = scmp.lt.s32.totalorder %s1419_s18, 3  ;;  %s163_s13 = scalar_lea.sflag [#allocation4], %s162_s29 }
  0x14   : > { %s1323_s14 = sshra.s32 %s173_s9, 4  ;;  %p1327_p3 = pneg %p1564_p13  ;;  %s1324_s14 = int_to_ptr.hbm [resolvable:$true] %s1323_s14 }
  0x15   : > { %s1325_s20 = scalar_lea.hbm %s1324_s14, 128  ;;  %s1330_s25 = scalar_lea.hbm %s2028_s0, 256 }
  0x16   : > { %p1326_p2 = scmp.ne.s32.totalorder %s1324_s14, %s1325_s20  ;;  %p1331_p5 = scmp.lt.s32.totalorder %s1324_s14, %s2028_s0 }
  0x17   : > { %p1332_p8 = scmp.lt.s32.totalorder %s1330_s25, %s1325_s20 }
  0x18   : > { %p1328_p4 = pnand %p1327_p3, %p1326_p2 }
  0x19   : > { %p1333_p10 = por %p1332_p8, %p1331_p5 }
  0x1a   : > { %p1329_p7 = pneg %p1328_p4 }
  0x1c   : > { %p1334_p9 = pnand %p1333_p10, %p1329_p7 }
  0x1e   : > { %1337 = shalt.err (!%p1334_p9)
}
  0x1f   : > { %s1421_s29 = smov 256   ;;  %s1422_s6 = smov 16  }
  0x20   : > { %1199 = dma.hbm_to_vmem [thread:$0]  (!%p1564_p13), %s173_s9, 2048, %s175_s11, %s163_s13, %s1421_s29, %s1421_s29, %s1422_s6  }
  0x21   : > { %p183_p2 = pnand %p1131_p0, %p182_p1 }
  0x22   : > { %s1585_s7 = sand.u32 (!%p183_p2), 1, %s1411_s16  }
  0x23   : > { %186 = sbr.rel (%p183_p2) target bundleno = 593 (0x251), region = 36  ;;  %s1132_s8 = sshll.u32 (!%p183_p2), %s1585_s7, 7 }
  0x24   : > { %s189_s10 = scalar_lea.sflag (!%p183_p2), [#allocation4], %s1585_s7  ;;  %s1591_s14 = scalar_lea.vmem (!%p183_p2), [#allocation3], %s1132_s8 }
  0x28   : > { %1398 = dma.done.wait (%p1542_p6), %s189_s10, 2048  }
  0x29   : > { %1400 = vsyncadd (%p1542_p6), %s189_s10, 4294965248  ;;  %v1423_v0 = vmov 0   ;;  %v378_v1 = vld [vmem:[%s2030_s2] sm:$0xff]  ;;  %v1607_v3 = vld [vmem:[%s1591_s14 + $0x8] sm:$0xff]  ;;  %v218_v33 = vlaneseq  ;;  %v1424_v34 = vmov 0.0   ;;  %vm285_vm1 = vcmask 130112  }
  0x2a   : > { %1291 = vset.pattern.permute.xlu0 %v1423_v0  ;;  %1292 = vset.pattern.permute.xlu1 %v1423_v0  ;;  %v1604_v2 = vld [vmem:[%s1591_s14] sm:$0xff]  ;;  %v1612_v5 = vld [vmem:[%s1591_s14 + $0x10] sm:$0xff]  ;;  %v1615_v6 = vld [vmem:[%s1591_s14 + $0x18] sm:$0xff]  ;;  %vm289_vm2 = vcmask 195712   ;;  %vm293_vm3 = vcmask 261312   ;;  %vm297_vm4 = vcmask 326912  }
  0x2b   : > { %1293 = vset.pattern.permute.xlu2 %v1423_v0  ;;  %388 = vperm.xlu0 %1291, %v378_v1   ;;  %v240_v4 = vadd.f32 %v1607_v3, %v1604_v2  ;;  %v243_v7 = vadd.f32 %v1615_v6, %v1612_v5  ;;  %v1620_v8 = vld [vmem:[%s1591_s14 + $0x30] sm:$0xff]  ;;  %v1623_v9 = vld [vmem:[%s1591_s14 + $0x38] sm:$0xff]  ;;  %v379_v10 = vld [vmem:[%s2030_s2 + $0x8] sm:$0xff]  ;;  %vm220_vm0 = vcmp.lt.s32.totalorder %v218_v33, 128  ;;  %v281_v50 = vand.u32 127, %v218_v33  ;;  %s1425_s13 = smov 47  }
  0x2c   : > { %v249_v11 = vadd.f32 %v1623_v9, %v1620_v8  ;;  %v380_v12 = vld [vmem:[%s2030_s2 + $0x10] sm:$0xff]  ;;  %v382_v13 = vld [vmem:[%s2030_s2 + $0x20] sm:$0xff]  ;;  %v381_v14 = vld [vmem:[%s2030_s2 + $0x18] sm:$0xff]  ;;  %222 = vst.msk [vmem:[#allocation2] sm:$0x1] %vm220_vm0, %v1424_v34  ;;  %vm301_vm5 = vcmask 392512  }
  0x2d   : > { %241 = vadd.xlane.f32.xlu1 %v240_v4  ;;  %244 = vadd.xlane.f32.xlu2 %v243_v7  ;;  %v383_v15 = vld [vmem:[%s2030_s2 + $0x28] sm:$0xff]  ;;  %v1659_v22 = vld [vmem:[%s1591_s14 + $0x50] sm:$0xff]  ;;  %v1662_v23 = vld [vmem:[%s1591_s14 + $0x58] sm:$0xff]  ;;  %223 = vst.msk [vmem:[#allocation2 + $0x3] sm:$0x1] %vm220_vm0, %v1424_v34  ;;  %v283_v51 = vadd.s32 4294967288, %v281_v50 }
  0x2e   : > { %v1643_v16 = vld [vmem:[%s1591_s14 + $0x20] sm:$0xff]  ;;  %v1646_v17 = vld [vmem:[%s1591_s14 + $0x28] sm:$0xff]  ;;  %v255_v24 = vadd.f32 %v1662_v23, %v1659_v22  ;;  %v385_v25 = vld [vmem:[%s2030_s2 + $0x38] sm:$0xff]  ;;  %v287_v53 = vadd.s32 4294967280, %v281_v50  ;;  %v291_v57 = vadd.s32 4294967272, %v281_v50  ;;  %v295_v60 = vadd.s32 4294967264, %v281_v50 }
  0x2f   : > { %v246_v18 = vadd.f32 %v1646_v17, %v1643_v16  ;;  %v1651_v19 = vld [vmem:[%s1591_s14 + $0x40] sm:$0xff]  ;;  %v1654_v20 = vld [vmem:[%s1591_s14 + $0x48] sm:$0xff]  ;;  %v1678_v29 = vld [vmem:[%s1591_s14 + $0x70] sm:$0xff]  ;;  %v299_v61 = vadd.s32 4294967256, %v281_v50  ;;  %v303_v62 = vadd.s32 4294967248, %v281_v50  ;;  %vm305_vm6 = vcmask 458112  }
  0x30   : > { %v252_v21 = vadd.f32 %v1654_v20, %v1651_v19  ;;  %v1670_v26 = vld [vmem:[%s1591_s14 + $0x60] sm:$0xff]  ;;  %v1673_v27 = vld [vmem:[%s1591_s14 + $0x68] sm:$0xff]  ;;  %v1681_v30 = vld [vmem:[%s1591_s14 + $0x78] sm:$0xff]  ;;  %vm309_vm7 = vcmask 523712   ;;  %vm311_vm8 = vcmask 523264   ;;  %vm471_vm9 = vcmask 1040384  }
  0x31   : > { %v258_v28 = vadd.f32 %v1673_v27, %v1670_v26  ;;  %v261_v31 = vadd.f32 %v1681_v30, %v1678_v29  ;;  %v384_v32 = vld [vmem:[%s2030_s2 + $0x30] sm:$0xff]  ;;  %v271_v35 = vld [vmem:[%s2029_s1 + $0x38] sm:$0xff]  ;;  %v269_v38 = vld [vmem:[%s2029_s1 + $0x28] sm:$0xff]  ;;  %vm474_vm10 = vcmp.lt.s32.totalorder %v218_v33, 256  ;;  %s1426_s20 = smov 50   ;;  %s1427_s22 = smov 51  }
  0x32   : > { %322 = vmatpush.msra.mxu0 %v271_v35  ;;  %v270_v37 = vld [vmem:[%s2029_s1 + $0x30] sm:$0xff]  ;;  %v268_v39 = vld [vmem:[%s2029_s1 + $0x20] sm:$0xff]  ;;  %v267_v40 = vld [vmem:[%s2029_s1 + $0x18] sm:$0xff]  ;;  %s1428_s23 = smov 30   ;;  %s1429_s25 = smov 48   ;;  %vm483_vm15 = vcmask 416768  }
  0x33   : > { %393 = vperm.xlu0 %1291, %v379_v10   ;;  %v266_v42 = vld [vmem:[%s2029_s1 + $0x10] sm:$0xff]  ;;  %v265_v43 = vld [vmem:[%s2029_s1 + $0x8] sm:$0xff]  ;;  %v264_v44 = vld [vmem:[%s2029_s1] sm:$0xff]  ;;  %s1430_s30 = smov 49   ;;  %s1431_s5 = smov 18   ;;  %vm493_vm0 = vcmask 408576  }
  0x34   : > { %323 = vmatpush.msra.mxu0 %v270_v37  ;;  %s1432_s29 = smov 45   ;;  %s1433_s6 = smov 46  }
  0x35   : > { %250 = vadd.xlane.f32.xlu2 %v249_v11  ;;  %s1434_s10 = smov 15   ;;  %s1435_s9 = smov 34  }
  0x36   : > { %324 = vmatpush.msra.mxu0 %v269_v38  ;;  %s1436_s11 = smov 35   ;;  %s1437_s26 = smov 3  }
  0x37   : > { %s1438_s12 = smov 32  }
  0x38   : > { %325 = vmatpush.msra.mxu0 %v268_v39 }
  0x3a   : > { %326 = vmatpush.msra.mxu0 %v267_v40 }
  0x3c   : > { %327 = vmatpush.msra.mxu0 %v266_v42 }
  0x3e   : > { %328 = vmatpush.msra.mxu0 %v265_v43 }
  0x40   : > { %329 = vmatpush.msra.mxu0 %v264_v44 }
  0x46   : > { %398 = vperm.xlu1 %1292, %v380_v12   ;;  %v307_v12 = vadd.s32 4294967240, %v281_v50 }
  0x4d   : > { %403 = vperm.xlu2 %1293, %v381_v14  }
  0x4e   : > { %408 = vperm.xlu1 %1292, %v382_v13  }
  0x55   : > { %413 = vperm.xlu2 %1293, %v383_v15  }
  0x5d   : > { %247 = vadd.xlane.f32.xlu0 %v246_v18  ;;  %423 = vperm.xlu2 %1293, %v385_v25  }
  0x65   : > { %253 = vadd.xlane.f32.xlu0 %v252_v21 }
  0x6d   : > { %256 = vadd.xlane.f32.xlu0 %v255_v24 }
  0x75   : > { %259 = vadd.xlane.f32.xlu0 %v258_v28 }
  0x78   : > { %262 = vadd.xlane.f32.xlu1 %v261_v31 }
  0x89   : > { %418 = vperm.xlu0 %1291, %v384_v32  }
  0x9d   : > { %v389_v36 = vpop.permute.xlu0 %388 }
  0x9e   : > { %v426_v32 = vmul.f32 %v389_v36, %v1604_v2  ;;  %v427_v35 = vmul.f32 %v389_v36, %v1607_v3 }
  0xa0   : > { %v242_v45 = vpop.xlane.xlu1 %241  ;;  %v245_v47 = vpop.xlane.xlu2 %244 }
  0xa1   : > { %v284_v55 = vperm.slane %v245_v47, %v283_v51  ;;  %v282_v56 = vperm.slane %v242_v45, %v281_v50 }
  0xa3   : > { %v286_v63 = vsel %vm285_vm1, %v284_v55, %v282_v56  ;;  %vm503_vm1 = vcmask 400384  }
  0xa5   : > { %v394_v41 = vpop.permute.xlu0 %393 }
  0xa6   : > { %v428_v18 = vmul.f32 %v394_v41, %v1612_v5  ;;  %v429_v25 = vmul.f32 %v394_v41, %v1615_v6 }
  0xa8   : > { %v251_v52 = vpop.xlane.xlu2 %250  ;;  %v442_v5 = vadd.f32 %v428_v18, %v426_v32  ;;  %v455_v40 = vadd.f32 %v429_v25, %v427_v35 }
  0xa9   : > { %v292_v1 = vperm.slane %v251_v52, %v291_v57 }
  0xb0   : > { %v404_v13 = vpop.permute.xlu2 %403 }
  0xb1   : > { %v432_v6 = vmul.f32 %v404_v13, %v1620_v8  ;;  %v433_v41 = vmul.f32 %v404_v13, %v1623_v9 }
  0xb8   : > { %v399_v49 = vpop.permute.xlu1 %398  ;;  %v414_v44 = vpop.permute.xlu2 %413 }
  0xb9   : > { %v430_v37 = vmul.f32 %v399_v49, %v1643_v16  ;;  %v431_v38 = vmul.f32 %v399_v49, %v1646_v17  ;;  %v436_v17 = vmul.f32 %v414_v44, %v1659_v22  ;;  %v437_v47 = vmul.f32 %v414_v44, %v1662_v23 }
  0xbb   : > { %v443_v42 = vadd.f32 %v442_v5, %v430_v37  ;;  %v456_v43 = vadd.f32 %v455_v40, %v431_v38 }
  0xbd   : > { %v444_v3 = vadd.f32 %v443_v42, %v432_v6  ;;  %v457_v36 = vadd.f32 %v456_v43, %v433_v41 }
  0xc0   : > { %v409_v58 = vpop.permute.xlu1 %408 }
  0xc1   : > { %v434_v2 = vmul.f32 %v409_v58, %v1651_v19  ;;  %v435_v45 = vmul.f32 %v409_v58, %v1654_v20 }
  0xc3   : > { %v445_v16 = vadd.f32 %v444_v3, %v434_v2  ;;  %v477_v3 = vld [vmem:[%s2031_s3] ss:$8 sm:$0x3] }
  0xc5   : > { %v446_v50 = vadd.f32 %v445_v16, %v436_v17 }
  0xd0   : > { %v248_v46 = vpop.xlane.xlu0 %247 }
  0xd1   : > { %v288_v59 = vperm.slane %v248_v46, %v287_v53  ;;  %v458_v46 = vadd.f32 %v457_v36, %v435_v45 }
  0xd3   : > { %v290_v4 = vsel %vm289_vm2, %v288_v59, %v286_v63  ;;  %v459_v51 = vadd.f32 %v458_v46, %v437_v47  ;;  %v1136_v46 = vld [vmem:[%s2031_s3 + $0x1] ss:$8 sm:$0x3]  ;;  %v1137_v47 = vld [vmem:[%s2031_s3 + $0x2] ss:$8 sm:$0x3] }
  0xd4   : > { %v294_v15 = vsel %vm293_vm3, %v292_v1, %v290_v4  ;;  %vm513_vm2 = vcmask 392192   ;;  %vm523_vm3 = vcmask 384000  }
  0xd8   : > { %v254_v48 = vpop.xlane.xlu0 %253 }
  0xd9   : > { %v296_v7 = vperm.slane %v254_v48, %v295_v60  ;;  %v424_v48 = vpop.permute.xlu2 %423 }
  0xda   : > { %v440_v19 = vmul.f32 %v424_v48, %v1678_v29  ;;  %v441_v20 = vmul.f32 %v424_v48, %v1681_v30 }
  0xdb   : > { %v298_v21 = vsel %vm297_vm4, %v296_v7, %v294_v15  ;;  %v355_v7 = vshrl.u32 %v218_v33, 7  ;;  %vm533_vm4 = vcmask 375808  }
  0xdd   : > { %1294 = vset.pattern.permute.xlu1 %v355_v7  ;;  %v374_v43 = vadd.s32 24, %v355_v7 }
  0xe0   : > { %v257_v54 = vpop.xlane.xlu0 %256 }
  0xe1   : > { %v300_v10 = vperm.slane %v257_v54, %v299_v61 }
  0xe3   : > { %v302_v28 = vsel %vm301_vm5, %v300_v10, %v298_v21  ;;  %vm543_vm5 = vcmask 367616  }
  0xe8   : > { %v260_v11 = vpop.xlane.xlu0 %259 }
  0xe9   : > { %v304_v14 = vperm.slane %v260_v11, %v303_v62 }
  0xeb   : > { %v263_v24 = vpop.xlane.xlu1 %262  ;;  %v306_v34 = vsel %vm305_vm6, %v304_v14, %v302_v28  ;;  %v362_v14 = vadd.s32 8, %v355_v7  ;;  %vm553_vm6 = vcmask 285696  }
  0xec   : > { %v308_v31 = vperm.slane %v263_v24, %v307_v12  ;;  %v368_v24 = vadd.s32 16, %v355_v7  ;;  %v1141_v7 = vld [vmem:[%s2031_s3 + $0x6] ss:$8 sm:$0x3] }
  0xed   : > { %1295 = vset.pattern.permute.xlu2 %v362_v14 }
  0xee   : > { %v310_v39 = vsel %vm309_vm7, %v308_v31, %v306_v34  ;;  %1296 = vset.pattern.permute.xlu0 %v368_v24  ;;  %vm563_vm7 = vcmask 277504  }
  0xef   : > { %1134 = vmatmul.msk.f32.vlgmr.msra.gmra.mxu0 %vm311_vm8, %v310_v39  ;;  %vm573_vm8 = vcmask 269312  }
  0xfb   : > { %v419_v49 = vpop.permute.xlu0 %418 }
  0xfc   : > { %v438_v8 = vmul.f32 %v419_v49, %v1670_v26  ;;  %v439_v9 = vmul.f32 %v419_v49, %v1673_v27 }
  0xfe   : > { %v447_v52 = vadd.f32 %v446_v50, %v438_v8  ;;  %v460_v53 = vadd.f32 %v459_v51, %v439_v9 }
 0x100   : > { %v448_v54 = vadd.f32 %v447_v52, %v440_v19  ;;  %v461_v55 = vadd.f32 %v460_v53, %v441_v20  ;;  %v1138_v52 = vld [vmem:[%s2031_s3 + $0x3] ss:$8 sm:$0x3] }
 0x102   : > { %v449_v56 = vrot.slane %v448_v54, 4  ;;  %v462_v22 = vrot.slane %v461_v55, 4 }
 0x104   : > { %v450_v57 = vadd.f32 %v449_v56, %v448_v54  ;;  %v463_v23 = vadd.f32 %v462_v22, %v461_v55 }
 0x106   : > { %v451_v58 = vrot.slane %v450_v57, 2  ;;  %v464_v59 = vrot.slane %v463_v23, 2 }
 0x108   : > { %v452_v60 = vadd.f32 %v451_v58, %v450_v57  ;;  %v465_v61 = vadd.f32 %v464_v59, %v463_v23  ;;  %v1139_v23 = vld [vmem:[%s2031_s3 + $0x4] ss:$8 sm:$0x3]  ;;  %v1140_v59 = vld [vmem:[%s2031_s3 + $0x5] ss:$8 sm:$0x3] }
 0x10a   : > { %v453_v62 = vrot.slane %v452_v60, 1  ;;  %v466_v26 = vrot.slane %v465_v61, 1 }
 0x10c   : > { %v467_v63 = vadd.f32 %v466_v26, %v465_v61  ;;  %v454_v27 = vadd.f32 %v453_v62, %v452_v60 }
 0x10e   : > { %v470_v29 = vrot.slane %v467_v63, 7 }
 0x110   : > { %v472_v30 = vsel %vm471_vm9, %v454_v27, %v470_v29  ;;  %vm583_vm9 = vcmask 261120  }
 0x111   : > { %476 = vst.msk [vmem:[#allocation2 + $0x1] sm:$0x3] %vm474_vm10, %v472_v30  ;;  %vm603_vm10 = vcmask 244736  }
 0x118   : > { %v478_v1 = vld [vmem:[#allocation2] sm:$0x7] }
 0x119   : > { %520 = vrot.lane.b32.xlu1 %v478_v1, %s1425_s13  ;;  %490 = vrot.lane.b32.xlu2 %v478_v1, %s1426_s20  ;;  %s1439_s13 = smov 33   ;;  %v1731_v4 = vld [vmem:[#allocation2 + $0x1] sm:$0x7]  ;;  %s1440_s20 = smov 127  }
 0x11a   : > { %480 = vrot.lane.b32.xlu0 %v478_v1, %s1427_s22  ;;  %s1441_s22 = smov 29  }
 0x121   : > { %600 = vrot.lane.b32.xlu1 %v478_v1, %s1428_s23  ;;  %510 = vrot.lane.b32.xlu2 %v478_v1, %s1429_s25  ;;  %s1442_s23 = smov 31   ;;  %s1443_s25 = smov 115  }
 0x122   : > { %500 = vrot.lane.b32.xlu0 %v478_v1, %s1430_s30  ;;  %s1444_s30 = smov 17  }
 0x129   : > { %630 = vrot.lane.b32.xlu1 %v478_v1, %s1431_s5  ;;  %540 = vrot.lane.b32.xlu2 %v478_v1, %s1432_s29  ;;  %s1445_s5 = smov 19   ;;  %s1446_s29 = smov 112  }
 0x12a   : > { %530 = vrot.lane.b32.xlu0 %v478_v1, %s1433_s6  ;;  %s1447_s6 = smov 14  }
 0x131   : > { %660 = vrot.lane.b32.xlu1 %v478_v1, %s1434_s10  ;;  %560 = vrot.lane.b32.xlu2 %v478_v1, %s1435_s9  ;;  %s1448_s10 = smov 16   ;;  %s1449_s9 = smov 109  }
 0x132   : > { %550 = vrot.lane.b32.xlu0 %v478_v1, %s1436_s11  ;;  %s1450_s11 = smov 2  }
 0x139   : > { %690 = vrot.lane.b32.xlu1 %v478_v1, %s1437_s26  ;;  %580 = vrot.lane.b32.xlu2 %v478_v1, %s1438_s12  ;;  %s1451_s26 = smov 13   ;;  %s1452_s12 = smov 97  }
 0x13a   : > { %570 = vrot.lane.b32.xlu0 %v478_v1, %s1439_s13  ;;  %s1453_s13 = smov 126  }
 0x141   : > { %727 = vrot.lane.b32.xlu1 %v1731_v4, %s1440_s20  ;;  %610 = vrot.lane.b32.xlu2 %v478_v1, %s1441_s22  ;;  %s1454_s20 = smov 1   ;;  %s1455_s22 = smov 94  }
 0x142   : > { %590 = vrot.lane.b32.xlu0 %v478_v1, %s1442_s23  ;;  %s1456_s23 = smov 114  }
 0x149   : > { %757 = vrot.lane.b32.xlu1 %v1731_v4, %s1443_s25  ;;  %640 = vrot.lane.b32.xlu2 %v478_v1, %s1444_s30  ;;  %s1457_s25 = smov 125   ;;  %s1458_s30 = smov 82  }
 0x14a   : > { %620 = vrot.lane.b32.xlu0 %v478_v1, %s1445_s5  ;;  %s1459_s5 = smov 111  }
 0x151   : > { %787 = vrot.lane.b32.xlu1 %v1731_v4, %s1446_s29  ;;  %670 = vrot.lane.b32.xlu2 %v478_v1, %s1447_s6  ;;  %s1460_s29 = smov 113   ;;  %s1461_s6 = smov 79  }
 0x152   : > { %650 = vrot.lane.b32.xlu0 %v478_v1, %s1448_s10 }
 0x159   : > { %817 = vrot.lane.b32.xlu1 %v1731_v4, %s1449_s9  ;;  %700 = vrot.lane.b32.xlu2 %v478_v1, %s1450_s11  ;;  %s1462_s9 = smov 99   ;;  %s1463_s11 = smov 110  }
 0x15a   : > { %680 = vrot.lane.b32.xlu0 %v478_v1, %s1451_s26  ;;  %s1464_s26 = smov 96  }
 0x161   : > { %847 = vrot.lane.b32.xlu1 %v1731_v4, %s1452_s12  ;;  %737 = vrot.lane.b32.xlu2 %v1731_v4, %s1453_s13  ;;  %s1465_s12 = smov 98   ;;  %s1466_s13 = smov 93  }
 0x162   : > { %710 = vrot.lane.b32.xlu0 %v478_v1, %s1454_s20  ;;  %s1467_s20 = smov 95  }
 0x169   : > { %877 = vrot.lane.b32.xlu1 %v1731_v4, %s1455_s22  ;;  %767 = vrot.lane.b32.xlu2 %v1731_v4, %s1456_s23  ;;  %s1468_s22 = smov 81   ;;  %s1469_s23 = smov 83  }
 0x16a   : > { %747 = vrot.lane.b32.xlu0 %v1731_v4, %s1457_s25 }
 0x16c   : > { %v331_v10 = vpop.f32.mrf.mxu0 }
 0x16d   : > { %v1135_v11 = vmul.f32 -1.442695, %v331_v10 }
 0x16f   : > { %1299 = vpow2.f32 %v1135_v11 }
 0x171   : > { %907 = vrot.lane.b32.xlu1 %v1731_v4, %s1458_s30  ;;  %797 = vrot.lane.b32.xlu2 %v1731_v4, %s1459_s5  ;;  %s1472_s30 = smov 77   ;;  %s1037_s5 = scalar_lea.sflag [#allocation5], %s1585_s7 }
 0x172   : > { %777 = vrot.lane.b32.xlu0 %v1731_v4, %s1460_s29 }
 0x173   : > { %v491_v33 = vpop.permute.xlu2 %490 }
 0x174   : > { %v492_v44 = vrot.slane %v491_v33, 1 }
 0x175   : > { %v1300_v12 = vpop.eup %1299 }
 0x176   : > { %v337_v13 = vadd.f32 1.0, %v1300_v12  ;;  %v494_v17 = vsel %vm493_vm0, %v491_v33, %v492_v44  ;;  %vm663_vm0 = vcmask 121856  }
 0x177   : > { %v496_v51 = vmul.f32 %v1136_v46, %v494_v17 }
 0x178   : > { %1301 = vrcp.f32 %v337_v13  ;;  %v349_v28 = vand.u32 2147483648, %v337_v13  ;;  %v347_v34 = vand.u32 2147483647, %v337_v13  ;;  %vm343_vm12 = vweird.f32 %v337_v13 }
 0x179   : > { %937 = vrot.lane.b32.xlu1 %v1731_v4, %s1461_s6  ;;  %827 = vrot.lane.b32.xlu2 %v1731_v4, %s1462_s9 }
 0x17a   : > { %807 = vrot.lane.b32.xlu0 %v1731_v4, %s1463_s11  ;;  %v350_v37 = vor.u32 1.1754944e-38, %v349_v28  ;;  %vm348_vm14 = vcmp.eq.f32.partialorder %v347_v34, 8.507059e+37  ;;  %s1470_s11 = smov 78   ;;  %v1144_v28 = vld [vmem:[%s2031_s3 + $0x11] ss:$8 sm:$0x3] }
 0x17b   : > { %v1750_v15 = vpop.permute.xlu2 %510 }
 0x17c   : > { %v512_v50 = vrot.slane %v1750_v15, 1 }
 0x17e   : > { %v1302_v18 = vpop.eup %1301  ;;  %v514_v53 = vsel %vm513_vm2, %v1750_v15, %v512_v50  ;;  %vm673_vm2 = vcmask 113664  }
 0x17f   : > { %v339_v21 = vmul.f32 %v1302_v18, %v337_v13  ;;  %vm344_vm11 = vweird.f32 %v1302_v18  ;;  %v516_v57 = vmul.f32 %v1138_v52, %v514_v53  ;;  %v1149_v53 = vld [vmem:[%s2031_s3 + $0x16] ss:$8 sm:$0x3] }
 0x180   : > { %vm345_vm13 = vmor %vm343_vm12, %vm344_vm11  ;;  %vm593_vm11 = vcmask 252928   ;;  %vm613_vm12 = vcmask 236544  }
 0x181   : > { %v340_v25 = vsub.f32 1.0, %v339_v21  ;;  %857 = vrot.lane.b32.xlu2 %v1731_v4, %s1464_s26  ;;  %s1471_s26 = smov 80  }
 0x182   : > { %837 = vrot.lane.b32.xlu0 %v1731_v4, %s1465_s12 }
 0x183   : > { %v1754_v31 = vpop.permute.xlu2 %540  ;;  %v341_v32 = vmul.f32 %v1302_v18, %v340_v25 }
 0x184   : > { %v542_v62 = vrot.slane %v1754_v31, 1 }
 0x185   : > { %v342_v35 = vadd.f32 %v1302_v18, %v341_v32 }
 0x186   : > { %v544_v10 = vsel %vm543_vm5, %v1754_v31, %v542_v62  ;;  %vm703_vm5 = vcmask 15360  }
 0x187   : > { %v346_v38 = vsel %vm345_vm13, %v1302_v18, %v342_v35  ;;  %v546_v14 = vmul.f32 %v1141_v7, %v544_v10  ;;  %v1143_v18 = vld [vmem:[%s2031_s3 + $0x10] ss:$8 sm:$0x3]  ;;  %vm633_vm13 = vcmask 146432  }
 0x188   : > { %v351_v39 = vsel %vm348_vm14, %v350_v37, %v346_v38  ;;  %vm623_vm14 = vcmask 154624  }
 0x189   : > { %887 = vrot.lane.b32.xlu2 %v1731_v4, %s1466_s13  ;;  %v1757_v5 = vperm.slane %v351_v39, 0 }
 0x18a   : > { %867 = vrot.lane.b32.xlu0 %v1731_v4, %s1467_s20  ;;  %s1964_s20 = scalar_lea.vmem [#allocation6], %s1132_s8  ;;  %s1191_s8 = sshll.u32 %s1520_s19, 7 }
 0x18b   : > { %358 = vperm.xlu1 %1294, %v1757_v5   ;;  %v1761_v40 = vpop.permute.xlu2 %560  ;;  %v521_v6 = vpop.permute.xlu1 %520  ;;  %s1049_s25 = sshll.u32 %s1964_s20, 4  ;;  %s1050_s25 = int_to_ptr.vmem [resolvable:$true] %s1049_s25 }
 0x18c   : > { %v481_v42 = vpop.permute.xlu0 %480  ;;  %v522_v54 = vrot.slane %v521_v6, 1  ;;  %v562_v13 = vrot.slane %v1761_v40, 1 }
 0x18d   : > { %v482_v41 = vrot.slane %v481_v42, 1 }
 0x18e   : > { %v524_v58 = vsel %vm523_vm3, %v521_v6, %v522_v54  ;;  %v564_v25 = vsel %vm563_vm7, %v1761_v40, %v562_v13  ;;  %vm693_vm3 = vcmask 23552   ;;  %vm730_vm7 = vcmask 1039360  }
 0x18f   : > { %v484_v36 = vsel %vm483_vm15, %v481_v42, %v482_v41  ;;  %v526_v26 = vmul.f32 %v1139_v23, %v524_v58  ;;  %v566_v38 = vmul.f32 %v1143_v18, %v564_v25  ;;  %vm643_vm15 = vcmask 138240   ;;  %v1154_v25 = vld [vmem:[%s2031_s3 + $0x23] ss:$8 sm:$0x3] }
 0x190   : > { %v486_v49 = vmul.f32 %v484_v36, %v477_v3 }
 0x191   : > { %917 = vrot.lane.b32.xlu2 %v1731_v4, %s1468_s22 }
 0x192   : > { %897 = vrot.lane.b32.xlu0 %v1731_v4, %s1469_s23  ;;  %v497_v19 = vadd.f32 %v496_v51, %v486_v49  ;;  %s1048_s23 = scalar_lea.hbm %s2032_s4, %s1191_s8 }
 0x193   : > { %1297 = vset.pattern.permute.xlu1 %v374_v43  ;;  %v1765_v2 = vpop.permute.xlu2 %580  ;;  %v1778_v8 = vpop.permute.xlu1 %600  ;;  %v1145_v43 = vld [vmem:[%s2031_s3 + $0x12] ss:$8 sm:$0x3] }
 0x194   : > { %v501_v45 = vpop.permute.xlu0 %500  ;;  %v582_v35 = vrot.slane %v1765_v2, 1  ;;  %v602_v40 = vrot.slane %v1778_v8, 1 }
 0x195   : > { %v502_v16 = vrot.slane %v501_v45, 1 }
 0x196   : > { %v584_v6 = vsel %vm583_vm9, %v1765_v2, %v582_v35  ;;  %v1155_v35 = vld [vmem:[%s2031_s3 + $0x24] ss:$8 sm:$0x3]  ;;  %vm760_vm9 = vcmask 941056  }
 0x197   : > { %v504_v48 = vsel %vm503_vm1, %v501_v45, %v502_v16  ;;  %v1146_v45 = vld [vmem:[%s2031_s3 + $0x13] ss:$8 sm:$0x3]  ;;  %v586_v36 = vmul.f32 %v1145_v43, %v584_v6  ;;  %v604_v16 = vsel %vm603_vm10, %v1778_v8, %v602_v40  ;;  %vm653_vm1 = vcmask 130048  }
 0x198   : > { %v506_v9 = vmul.f32 %v1137_v47, %v504_v48  ;;  %vm750_vm10 = vcmask 1022976  }
 0x199   : > { %947 = vrot.lane.b32.xlu2 %v1731_v4, %s1470_s11 }
 0x19a   : > { %927 = vrot.lane.b32.xlu0 %v1731_v4, %s1471_s26  ;;  %v507_v56 = vadd.f32 %v506_v9, %v497_v19  ;;  %v1148_v9 = vld [vmem:[%s2031_s3 + $0x15] ss:$8 sm:$0x3]  ;;  %s1373_s26 = scalar_lea.hbm %s2032_s4, 256 }
 0x19b   : > { %376 = vperm.xlu1 %1297, %v1757_v5   ;;  %v1786_v22 = vpop.permute.xlu2 %610  ;;  %v1797_v63 = vpop.permute.xlu1 %630 }
 0x19c   : > { %v531_v20 = vpop.permute.xlu0 %530  ;;  %v517_v61 = vadd.f32 %v516_v57, %v507_v56  ;;  %v612_v46 = vrot.slane %v1786_v22, 1  ;;  %v632_v51 = vrot.slane %v1797_v63, 1  ;;  %v1150_v56 = vld [vmem:[%s2031_s3 + $0x17] ss:$8 sm:$0x3] }
 0x19d   : > { %v532_v55 = vrot.slane %v531_v20, 1 }
 0x19e   : > { %v527_v1 = vadd.f32 %v526_v26, %v517_v61  ;;  %v614_v19 = vsel %vm613_vm12, %v1786_v22, %v612_v46  ;;  %v634_v57 = vsel %vm633_vm13, %v1797_v63, %v632_v51  ;;  %v720_v51 = vld [vmem:[#allocation2 + $0x1] sm:$0x3]  ;;  %vm790_vm12 = vcmask 916480  }
 0x19f   : > { %v534_v60 = vsel %vm533_vm4, %v531_v20, %v532_v55  ;;  %v616_v55 = vmul.f32 %v1148_v9, %v614_v19  ;;  %vm683_vm4 = vcmask 105472   ;;  %vm780_vm13 = vcmask 924672  }
 0x1a0   : > { %v536_v27 = vmul.f32 %v1140_v59, %v534_v60  ;;  %v636_v60 = vmul.f32 %v1150_v56, %v634_v57  ;;  %v1161_v57 = vld [vmem:[%s2031_s3 + $0x32] ss:$8 sm:$0x3] }
 0x1a1   : > { %364 = vperm.xlu2 %1295, %v1757_v5  }
 0x1a2   : > { %957 = vrot.lane.b32.xlu0 %v1731_v4, %s1472_s30  ;;  %v1142_v4 = vld [vmem:[%s2031_s3 + $0x7] ss:$8 sm:$0x3]  ;;  %v537_v33 = vadd.f32 %v536_v27, %v527_v1  ;;  %v1151_v27 = vld [vmem:[%s2031_s3 + $0x20] ss:$8 sm:$0x3] }
 0x1a3   : > { %v1806_v12 = vpop.permute.xlu2 %640  ;;  %v1817_v32 = vpop.permute.xlu1 %660  ;;  %v1152_v1 = vld [vmem:[%s2031_s3 + $0x21] ss:$8 sm:$0x3]  ;;  %s1051_s30 = sshll.u32 %s1048_s23, 4  ;;  %s1052_s30 = int_to_ptr.hbm [resolvable:$true] %s1051_s30 }
 0x1a4   : > { %v551_v29 = vpop.permute.xlu0 %550  ;;  %v547_v21 = vadd.f32 %v546_v14, %v537_v33  ;;  %v642_v23 = vrot.slane %v1806_v12, 1  ;;  %v662_v26 = vrot.slane %v1817_v32, 1  ;;  %s1367_s29 = sshra.s32 %s1052_s30, 4  ;;  %s1368_s29 = int_to_ptr.hbm [resolvable:$true] %s1367_s29 }
 0x1a5   : > { %v552_v30 = vrot.slane %v551_v29, 1  ;;  %s1369_s6 = scalar_lea.hbm %s1368_s29, 128  ;;  %p1374_p0 = scmp.lt.s32.totalorder %s1368_s29, %s2032_s4 }
 0x1a6   : > { %v664_v33 = vsel %vm663_vm0, %v1817_v32, %v662_v26  ;;  %vm810_vm0 = vcmask 900096   ;;  %p1370_p6 = scmp.ne.s32.totalorder %s1368_s29, %s1369_s6  ;;  %p1375_p1 = scmp.lt.s32.totalorder %s1373_s26, %s1369_s6 }
 0x1a7   : > { %v554_v11 = vsel %vm553_vm6, %v551_v29, %v552_v30  ;;  %v644_v29 = vsel %vm643_vm15, %v1806_v12, %v642_v23  ;;  %vm713_vm6 = vcmask 7168   ;;  %vm820_vm15 = vcmask 891904  }
 0x1a8   : > { %v556_v15 = vmul.f32 %v1142_v4, %v554_v11  ;;  %v646_v10 = vmul.f32 %v1151_v27, %v644_v29  ;;  %v1153_v11 = vld [vmem:[%s2031_s3 + $0x22] ss:$8 sm:$0x3]  ;;  %v1163_v27 = vld [vmem:[%s2031_s3 + $0x34] ss:$8 sm:$0x3]  ;;  %p1371_p9 = pnand %p1370_p6, %p1549_p11  ;;  %p1376_p3 = por %p1375_p1, %p1374_p0 }
 0x1a9   : > { %v666_v18 = vmul.f32 %v1153_v11, %v664_v33 }
 0x1aa   : > { %370 = vperm.xlu0 %1296, %v1757_v5   ;;  %v557_v34 = vadd.f32 %v556_v15, %v547_v21  ;;  %p1372_p13 = pneg %p1371_p9 }
 0x1ab   : > { %v1820_v5 = vpop.permute.xlu2 %670  ;;  %v691_v2 = vpop.permute.xlu1 %690 }
 0x1ac   : > { %v571_v24 = vpop.permute.xlu0 %570  ;;  %v567_v42 = vadd.f32 %v566_v38, %v557_v34  ;;  %v672_v13 = vrot.slane %v1820_v5, 1  ;;  %p1377_p4 = pnand %p1376_p3, %p1372_p13 }
 0x1ad   : > { %v572_v31 = vrot.slane %v571_v24, 1 }
 0x1af   : > { %v574_v37 = vsel %vm573_vm8, %v571_v24, %v572_v31  ;;  %v692_v24 = vrot.slane %v691_v2, 1  ;;  %vm740_vm8 = vcmask 1031168  }
 0x1b0   : > { %v576_v39 = vmul.f32 %v1144_v28, %v574_v37  ;;  %v674_v28 = vsel %vm673_vm2, %v1820_v5, %v672_v13  ;;  %v1164_v13 = vld [vmem:[%s2031_s3 + $0x35] ss:$8 sm:$0x3]  ;;  %vm850_vm2 = vcmask 793600  }
 0x1b1   : > { %v676_v38 = vmul.f32 %v1154_v25, %v674_v28  ;;  %v1166_v28 = vld [vmem:[%s2031_s3 + $0x37] ss:$8 sm:$0x3] }
 0x1b2   : > { %1298 = vset.pattern.permute.xlu0 %v1423_v0  ;;  %v577_v41 = vadd.f32 %v576_v39, %v567_v42  ;;  %v1147_v0 = vld [vmem:[%s2031_s3 + $0x14] ss:$8 sm:$0x3]  ;;  %v1156_v39 = vld [vmem:[%s2031_s3 + $0x25] ss:$8 sm:$0x3]  ;;  %v694_v42 = vsel %vm693_vm3, %v691_v2, %v692_v24 }
 0x1b3   : > { %v606_v49 = vmul.f32 %v1147_v0, %v604_v16  ;;  %v701_v20 = vpop.permute.xlu2 %700  ;;  %v1849_v61 = vpop.permute.xlu1 %727  ;;  %vm840_vm3 = vcmask 801792  }
 0x1b4   : > { %v591_v44 = vpop.permute.xlu0 %590  ;;  %v587_v47 = vadd.f32 %v586_v36, %v577_v41  ;;  %v702_v40 = vrot.slane %v701_v20, 1  ;;  %v729_v46 = vrot.slane %v1849_v61, 1 }
 0x1b5   : > { %v592_v3 = vrot.slane %v591_v44, 1 }
 0x1b6   : > { %v704_v36 = vsel %vm703_vm5, %v701_v20, %v702_v40  ;;  %vm880_vm5 = vcmask 769024  }
 0x1b7   : > { %v594_v17 = vsel %vm593_vm11, %v591_v44, %v592_v3  ;;  %v696_v44 = vmul.f32 %v1156_v39, %v694_v42  ;;  %v1157_v3 = vld [vmem:[%s2031_s3 + $0x26] ss:$8 sm:$0x3]  ;;  %vm770_vm11 = vcmask 932864  }
 0x1b8   : > { %v596_v48 = vmul.f32 %v1146_v45, %v594_v17  ;;  %v1158_v17 = vld [vmem:[%s2031_s3 + $0x27] ss:$8 sm:$0x3] }
 0x1ba   : > { %v597_v50 = vadd.f32 %v596_v48, %v587_v47  ;;  %v706_v47 = vmul.f32 %v1157_v3, %v704_v36 }
 0x1bb   : > { %v738_v4 = vpop.permute.xlu2 %737  ;;  %v758_v31 = vpop.permute.xlu1 %757 }
 0x1bc   : > { %v607_v8 = vadd.f32 %v606_v49, %v597_v50  ;;  %v621_v52 = vpop.permute.xlu0 %620  ;;  %v739_v49 = vrot.slane %v738_v4, 1  ;;  %v1159_v50 = vld [vmem:[%s2031_s3 + $0x30] ss:$8 sm:$0x3]  ;;  %v759_v56 = vrot.slane %v758_v31, 1 }
 0x1bd   : > { %v622_v54 = vrot.slane %v621_v52, 1 }
 0x1be   : > { %v617_v58 = vadd.f32 %v616_v55, %v607_v8  ;;  %v1160_v8 = vld [vmem:[%s2031_s3 + $0x31] ss:$8 sm:$0x3]  ;;  %v741_v23 = vsel %vm740_vm8, %v738_v4, %v739_v49  ;;  %v761_v29 = vsel %vm760_vm9, %v758_v31, %v759_v56  ;;  %vm910_vm8 = vcmask 670720  }
 0x1bf   : > { %v624_v22 = vsel %vm623_vm14, %v621_v52, %v622_v54  ;;  %v731_v52 = vsel %vm730_vm7, %v1849_v61, %v729_v46  ;;  %v721_v54 = vmul.f32 %v1159_v50, %v720_v51  ;;  %v743_v61 = vmul.f32 %v1161_v57, %v741_v23  ;;  %v1170_v51 = vld [vmem:[%s2031_s3 + $0x43] ss:$8 sm:$0x3] }
 0x1c0   : > { %v626_v59 = vmul.f32 %v1149_v53, %v624_v22  ;;  %v733_v22 = vmul.f32 %v1160_v8, %v731_v52  ;;  %v763_v4 = vmul.f32 %v1163_v27, %v761_v29  ;;  %vm800_vm14 = vcmask 908288   ;;  %v1171_v52 = vld [vmem:[%s2031_s3 + $0x44] ss:$8 sm:$0x3] }
 0x1c1   : > { %vm890_vm7 = vcmask 760832   ;;  %vm900_vm9 = vcmask 678912  }
 0x1c2   : > { %v627_v62 = vadd.f32 %v626_v59, %v617_v58 }
 0x1c3   : > { %v768_v5 = vpop.permute.xlu2 %767  ;;  %v788_v48 = vpop.permute.xlu1 %787 }
 0x1c4   : > { %v637_v63 = vadd.f32 %v636_v60, %v627_v62  ;;  %v651_v30 = vpop.permute.xlu0 %650  ;;  %v1162_v60 = vld [vmem:[%s2031_s3 + $0x33] ss:$8 sm:$0x3]  ;;  %v789_v33 = vrot.slane %v788_v48, 1 }
 0x1c5   : > { %v652_v7 = vrot.slane %v651_v30, 1 }
 0x1c6   : > { %v647_v14 = vadd.f32 %v646_v10, %v637_v63  ;;  %v769_v63 = vrot.slane %v768_v5, 1  ;;  %v791_v31 = vsel %vm790_vm12, %v788_v48, %v789_v33  ;;  %vm930_vm12 = vcmask 654336  }
 0x1c7   : > { %v654_v12 = vsel %vm653_vm1, %v651_v30, %v652_v7  ;;  %vm830_vm1 = vcmask 809984  }
 0x1c8   : > { %v656_v15 = vmul.f32 %v1152_v1, %v654_v12  ;;  %v771_v12 = vsel %vm770_vm11, %v768_v5, %v769_v63  ;;  %vm940_vm11 = vcmask 646144  }
 0x1c9   : > { %v773_v25 = vmul.f32 %v1164_v13, %v771_v12 }
 0x1ca   : > { %v657_v21 = vadd.f32 %v656_v15, %v647_v14 }
 0x1cb   : > { %v798_v53 = vpop.permute.xlu2 %797  ;;  %v818_v1 = vpop.permute.xlu1 %817 }
 0x1cc   : > { %v667_v34 = vadd.f32 %v666_v18, %v657_v21  ;;  %v681_v32 = vpop.permute.xlu0 %680  ;;  %v1165_v21 = vld [vmem:[%s2031_s3 + $0x36] ss:$8 sm:$0x3]  ;;  %v819_v40 = vrot.slane %v818_v1, 1 }
 0x1cd   : > { %v682_v37 = vrot.slane %v681_v32, 1 }
 0x1ce   : > { %v677_v6 = vadd.f32 %v676_v38, %v667_v34  ;;  %v799_v34 = vrot.slane %v798_v53, 1  ;;  %v793_v38 = vmul.f32 %v1166_v28, %v791_v31 }
 0x1cf   : > { %v684_v43 = vsel %vm683_vm4, %v681_v32, %v682_v37  ;;  %vm860_vm4 = vcmask 785408  }
 0x1d0   : > { %v686_v41 = vmul.f32 %v1155_v35, %v684_v43  ;;  %v1167_v43 = vld [vmem:[%s2031_s3 + $0x40] ss:$8 sm:$0x3]  ;;  %v801_v5 = vsel %vm800_vm14, %v798_v53, %v799_v34  ;;  %vm960_vm14 = vcmask 629760  }
 0x1d1   : > { %v803_v3 = vmul.f32 %v1167_v43, %v801_v5 }
 0x1d2   : > { %v687_v45 = vadd.f32 %v686_v41, %v677_v6 }
 0x1d3   : > { %v828_v14 = vpop.permute.xlu2 %827  ;;  %v848_v39 = vpop.permute.xlu1 %847 }
 0x1d4   : > { %v697_v0 = vadd.f32 %v696_v44, %v687_v45  ;;  %v711_v16 = vpop.permute.xlu0 %710  ;;  %v1168_v44 = vld [vmem:[%s2031_s3 + $0x41] ss:$8 sm:$0x3]  ;;  %v829_v46 = vrot.slane %v828_v14, 1  ;;  %v849_v50 = vrot.slane %v848_v39, 1 }
 0x1d5   : > { %v712_v2 = vrot.slane %v711_v16, 1 }
 0x1d6   : > { %v707_v19 = vadd.f32 %v706_v47, %v697_v0  ;;  %v1169_v0 = vld [vmem:[%s2031_s3 + $0x42] ss:$8 sm:$0x3]  ;;  %v851_v56 = vsel %vm850_vm2, %v848_v39, %v849_v50 }
 0x1d7   : > { %v714_v9 = vsel %vm713_vm6, %v711_v16, %v712_v2  ;;  %v821_v16 = vsel %vm820_vm15, %v818_v1, %v819_v40  ;;  %vm870_vm6 = vcmask 777216  }
 0x1d8   : > { %v716_v20 = vmul.f32 %v1158_v17, %v714_v9  ;;  %v823_v48 = vmul.f32 %v1169_v0, %v821_v16  ;;  %v831_v9 = vsel %vm830_vm1, %v828_v14, %v829_v46 }
 0x1da   : > { %v717_v55 = vadd.f32 %v716_v20, %v707_v19 }
 0x1db   : > { %v858_v36 = vpop.permute.xlu2 %857  ;;  %v878_v19 = vpop.permute.xlu1 %877 }
 0x1dc   : > { %v722_v58 = vadd.f32 %v721_v54, %v717_v55  ;;  %v748_v59 = vpop.permute.xlu0 %747  ;;  %v833_v54 = vmul.f32 %v1170_v51, %v831_v9  ;;  %v1172_v55 = vld [vmem:[%s2031_s3 + $0x45] ss:$8 sm:$0x3]  ;;  %v859_v57 = vrot.slane %v858_v36, 1 }
 0x1dd   : > { %v749_v62 = vrot.slane %v748_v59, 1 }
 0x1de   : > { %v734_v26 = vadd.f32 %v733_v22, %v722_v58  ;;  %v861_v27 = vsel %vm860_vm4, %v858_v36, %v859_v57 }
 0x1df   : > { %v751_v30 = vsel %vm750_vm10, %v748_v59, %v749_v62  ;;  %vm920_vm10 = vcmask 662528  }
 0x1e0   : > { %v744_v7 = vadd.f32 %v743_v61, %v734_v26  ;;  %v753_v10 = vmul.f32 %v1162_v60, %v751_v30  ;;  %v853_v60 = vmul.f32 %v1172_v55, %v851_v56  ;;  %v879_v61 = vrot.slane %v878_v19, 1  ;;  %v1173_v26 = vld [vmem:[%s2031_s3 + $0x46] ss:$8 sm:$0x3] }
 0x1e1   : > { %v1174_v30 = vld [vmem:[%s2031_s3 + $0x47] ss:$8 sm:$0x3]  ;;  %v1183_v56 = vld [vmem:[%s2031_s3 + $0x60] ss:$8 sm:$0x3] }
 0x1e2   : > { %v754_v11 = vadd.f32 %v753_v10, %v744_v7  ;;  %v863_v7 = vmul.f32 %v1173_v26, %v861_v27 }
 0x1e3   : > { %v888_v22 = vpop.permute.xlu2 %887  ;;  %v908_v10 = vpop.permute.xlu1 %907 }
 0x1e4   : > { %v764_v15 = vadd.f32 %v763_v4, %v754_v11  ;;  %v778_v18 = vpop.permute.xlu0 %777  ;;  %v1175_v4 = vld [vmem:[%s2031_s3 + $0x50] ss:$8 sm:$0x3]  ;;  %v881_v11 = vsel %vm880_vm5, %v878_v19, %v879_v61  ;;  %v889_v33 = vrot.slane %v888_v22, 1 }
 0x1e5   : > { %v779_v24 = vrot.slane %v778_v18, 1 }
 0x1e6   : > { %v774_v35 = vadd.f32 %v773_v25, %v764_v15  ;;  %v883_v15 = vmul.f32 %v1175_v4, %v881_v11  ;;  %v1176_v25 = vld [vmem:[%s2031_s3 + $0x51] ss:$8 sm:$0x3]  ;;  %v891_v28 = vsel %vm890_vm7, %v888_v22, %v889_v33 }
 0x1e7   : > { %v781_v32 = vsel %vm780_vm13, %v778_v18, %v779_v24  ;;  %v909_v24 = vrot.slane %v908_v10, 1  ;;  %vm950_vm13 = vcmask 637952  }
 0x1e8   : > { %v783_v37 = vmul.f32 %v1165_v21, %v781_v32  ;;  %v1177_v32 = vld [vmem:[%s2031_s3 + $0x52] ss:$8 sm:$0x3] }
 0x1e9   : > { %v911_v39 = vsel %vm910_vm8, %v908_v10, %v909_v24 }
 0x1ea   : > { %v784_v42 = vadd.f32 %v783_v37, %v774_v35  ;;  %v893_v37 = vmul.f32 %v1176_v25, %v891_v28 }
 0x1eb   : > { %v918_v18 = vpop.permute.xlu2 %917  ;;  %v938_v43 = vpop.permute.xlu1 %937 }
 0x1ec   : > { %v794_v6 = vadd.f32 %v793_v38, %v784_v42  ;;  %v808_v41 = vpop.permute.xlu0 %807  ;;  %v1178_v38 = vld [vmem:[%s2031_s3 + $0x53] ss:$8 sm:$0x3]  ;;  %v919_v42 = vrot.slane %v918_v18, 1 }
 0x1ed   : > { %v809_v45 = vrot.slane %v808_v41, 1 }
 0x1ee   : > { %v804_v2 = vadd.f32 %v803_v3, %v794_v6  ;;  %v1179_v3 = vld [vmem:[%s2031_s3 + $0x54] ss:$8 sm:$0x3]  ;;  %v921_v36 = vsel %vm920_vm10, %v918_v18, %v919_v42 }
 0x1ef   : > { %v811_v17 = vsel %vm810_vm0, %v808_v41, %v809_v45  ;;  %v913_v41 = vmul.f32 %v1178_v38, %v911_v39  ;;  %v939_v45 = vrot.slane %v938_v43, 1  ;;  %v1308_v38 = vld [vmem:[%s1591_s14 + $0x8] sm:$0xff]  ;;  %v1309_v42 = vld [vmem:[%s1591_s14 + $0x10] sm:$0xff] }
 0x1f0   : > { %v813_v47 = vmul.f32 %v1168_v44, %v811_v17  ;;  %v1180_v17 = vld [vmem:[%s2031_s3 + $0x55] ss:$8 sm:$0x3] }
 0x1f2   : > { %v814_v49 = vadd.f32 %v813_v47, %v804_v2  ;;  %v923_v47 = vmul.f32 %v1179_v3, %v921_v36  ;;  %v1312_v3 = vld [vmem:[%s1591_s14 + $0x38] sm:$0xff] }
 0x1f3   : > { %v948_v0 = vpop.permute.xlu2 %947 }
 0x1f4   : > { %v824_v20 = vadd.f32 %v823_v48, %v814_v49  ;;  %v838_v8 = vpop.permute.xlu0 %837  ;;  %v1181_v48 = vld [vmem:[%s2031_s3 + $0x56] ss:$8 sm:$0x3]  ;;  %v941_v49 = vsel %vm940_vm11, %v938_v43, %v939_v45  ;;  %v949_v50 = vrot.slane %v948_v0, 1 }
 0x1f5   : > { %v839_v53 = vrot.slane %v838_v8, 1 }
 0x1f6   : > { %v834_v58 = vadd.f32 %v833_v54, %v824_v20  ;;  %v943_v20 = vmul.f32 %v1181_v48, %v941_v49  ;;  %v1316_v48 = vld [vmem:[%s1591_s14 + $0x58] sm:$0xff] }
 0x1f7   : > { %v841_v23 = vsel %vm840_vm3, %v838_v8, %v839_v53  ;;  %v951_v53 = vsel %vm950_vm13, %v948_v0, %v949_v50  ;;  %v1313_v0 = vld [vmem:[%s1591_s14 + $0x40] sm:$0xff] }
 0x1f8   : > { %v843_v59 = vmul.f32 %v1171_v52, %v841_v23  ;;  %v1182_v52 = vld [vmem:[%s2031_s3 + $0x57] ss:$8 sm:$0x3] }
 0x1f9   : > { %v953_v23 = vmul.f32 %v1182_v52, %v951_v53  ;;  %v1319_v53 = vld [vmem:[%s1591_s14 + $0x70] sm:$0xff] }
 0x1fa   : > { %v844_v62 = vadd.f32 %v843_v59, %v834_v58 }
 0x1fb   : > { %v365_v18 = vpop.permute.xlu2 %364 }
 0x1fc   : > { %v854_v29 = vadd.f32 %v853_v60, %v844_v62  ;;  %v868_v63 = vpop.permute.xlu0 %867 }
 0x1fd   : > { %v869_v1 = vrot.slane %v868_v63, 1 }
 0x1fe   : > { %v864_v12 = vadd.f32 %v863_v7, %v854_v29 }
 0x1ff   : > { %v871_v13 = vsel %vm870_vm6, %v868_v63, %v869_v1  ;;  %v359_v1 = vpop.permute.xlu1 %358 }
 0x200   : > { %v873_v14 = vmul.f32 %v1174_v30, %v871_v13 }
 0x202   : > { %v874_v21 = vadd.f32 %v873_v14, %v864_v12 }
 0x204   : > { %v884_v31 = vadd.f32 %v883_v15, %v874_v21  ;;  %v898_v34 = vpop.permute.xlu0 %897 }
 0x205   : > { %v899_v35 = vrot.slane %v898_v34, 1 }
 0x206   : > { %v894_v5 = vadd.f32 %v893_v37, %v884_v31 }
 0x207   : > { %v901_v40 = vsel %vm900_vm9, %v898_v34, %v899_v35  ;;  %v1307_v35 = vld [vmem:[%s1591_s14] sm:$0xff] }
 0x208   : > { %v903_v6 = vmul.f32 %v1177_v32, %v901_v40 }
 0x20a   : > { %v904_v44 = vadd.f32 %v903_v6, %v894_v5  ;;  %v1310_v5 = vld [vmem:[%s1591_s14 + $0x18] sm:$0xff] }
 0x20c   : > { %v914_v16 = vadd.f32 %v913_v41, %v904_v44  ;;  %v928_v46 = vpop.permute.xlu0 %927  ;;  %v1311_v44 = vld [vmem:[%s1591_s14 + $0x30] sm:$0xff] }
 0x20d   : > { %v929_v2 = vrot.slane %v928_v46, 1  ;;  %v377_v21 = vpop.permute.xlu1 %376 }
 0x20e   : > { %v924_v9 = vadd.f32 %v923_v47, %v914_v16 }
 0x20f   : > { %v931_v51 = vsel %vm930_vm12, %v928_v46, %v929_v2  ;;  %v1314_v46 = vld [vmem:[%s1591_s14 + $0x48] sm:$0xff]  ;;  %v1315_v2 = vld [vmem:[%s1591_s14 + $0x50] sm:$0xff] }
 0x210   : > { %v933_v19 = vmul.f32 %v1180_v17, %v931_v51  ;;  %v1317_v51 = vld [vmem:[%s1591_s14 + $0x60] sm:$0xff] }
 0x212   : > { %v934_v8 = vadd.f32 %v933_v19, %v924_v9 }
 0x214   : > { %v944_v54 = vadd.f32 %v943_v20, %v934_v8  ;;  %v958_v55 = vpop.permute.xlu0 %957  ;;  %v1318_v20 = vld [vmem:[%s1591_s14 + $0x68] sm:$0xff] }
 0x215   : > { %v959_v57 = vrot.slane %v958_v55, 1 }
 0x216   : > { %v954_v58 = vadd.f32 %v953_v23, %v944_v54 }
 0x217   : > { %v961_v22 = vsel %vm960_vm14, %v958_v55, %v959_v57  ;;  %v1320_v55 = vld [vmem:[%s1591_s14 + $0x78] sm:$0xff]  ;;  %v1321_v57 = vld [vmem:[%s1591_s14 + $0x20] sm:$0xff] }
 0x218   : > { %v963_v59 = vmul.f32 %v1183_v56, %v961_v22  ;;  %v1322_v22 = vld [vmem:[%s1591_s14 + $0x28] sm:$0xff] }
 0x21a   : > { %v964_v60 = vadd.f32 %v963_v59, %v954_v58 }
 0x21c   : > { %v1184_v62 = vmul.f32 -1.442695, %v964_v60  ;;  %v371_v50 = vpop.permute.xlu0 %370 }
 0x21e   : > { %1303 = vpow2.f32 %v1184_v62 }
 0x224   : > { %v1304_v61 = vpop.eup %1303 }
 0x225   : > { %v969_v26 = vadd.f32 1.0, %v1304_v61 }
 0x227   : > { %1305 = vrcp.f32 %v969_v26  ;;  %v981_v30 = vand.u32 2147483648, %v969_v26  ;;  %v979_v10 = vand.u32 2147483647, %v969_v26  ;;  %vm975_vm0 = vweird.f32 %v969_v26 }
 0x229   : > { %v982_v11 = vor.u32 1.1754944e-38, %v981_v30  ;;  %vm980_vm2 = vcmp.eq.f32.partialorder %v979_v10, 8.507059e+37 }
 0x22d   : > { %v1306_v27 = vpop.eup %1305 }
 0x22e   : > { %v971_v29 = vmul.f32 %v1306_v27, %v969_v26  ;;  %vm976_vm15 = vweird.f32 %v1306_v27 }
 0x22f   : > { %vm977_vm1 = vmor %vm975_vm0, %vm976_vm15 }
 0x230   : > { %v972_v63 = vsub.f32 1.0, %v971_v29 }
 0x232   : > { %v973_v7 = vmul.f32 %v1306_v27, %v972_v63 }
 0x234   : > { %v974_v4 = vadd.f32 %v1306_v27, %v973_v7 }
 0x236   : > { %v978_v33 = vsel %vm977_vm1, %v1306_v27, %v974_v4 }
 0x237   : > { %v983_v13 = vsel %vm980_vm2, %v982_v11, %v978_v33 }
 0x238   : > { %v986_v12 = vperm.slane %v983_v13, 0  ;;  %v987_v14 = vperm.slane %v983_v13, 1  ;;  %v1014_v15 = vadd.f32 0.5, %v983_v13 }
 0x23a   : > { %v990_v24 = vadd.f32 %v986_v12, %v359_v1  ;;  %v991_v25 = vadd.f32 %v987_v14, %v359_v1  ;;  %v992_v28 = vadd.f32 %v986_v12, %v365_v18  ;;  %v993_v31 = vadd.f32 %v987_v14, %v365_v18 }
 0x23b   : > { %v996_v34 = vadd.f32 %v986_v12, %v377_v21  ;;  %v997_v32 = vadd.f32 %v987_v14, %v377_v21  ;;  %v1016_v43 = vperm.slane %v1014_v15, 0  ;;  %v1017_v41 = vperm.slane %v1014_v15, 1 }
 0x23c   : > { %v998_v37 = vmul.f32 %v1307_v35, %v990_v24  ;;  %v999_v39 = vmul.f32 %v1308_v38, %v991_v25  ;;  %v1000_v40 = vmul.f32 %v1309_v42, %v992_v28  ;;  %v1001_v6 = vmul.f32 %v1310_v5, %v993_v31 }
 0x23d   : > { %v1004_v45 = vmul.f32 %v1311_v44, %v996_v34  ;;  %v1005_v36 = vmul.f32 %v1312_v3, %v997_v32  ;;  %v1020_v16 = vmul.f32 %v1313_v0, %v1016_v43  ;;  %v1021_v17 = vmul.f32 %v1314_v46, %v1017_v41 }
 0x23e   : > { %1006 = vst [vmem:[%s1964_s20] sm:$0xff] %v998_v37  ;;  %v1022_v47 = vmul.f32 %v1315_v2, %v1016_v43  ;;  %v1023_v49 = vmul.f32 %v1316_v48, %v1017_v41  ;;  %v1024_v9 = vmul.f32 %v1317_v51, %v1016_v43  ;;  %v994_v19 = vadd.f32 %v986_v12, %v371_v50 }
 0x23f   : > { %1007 = vst [vmem:[%s1964_s20 + $0x8] sm:$0xff] %v999_v39  ;;  %v1025_v8 = vmul.f32 %v1318_v20, %v1017_v41  ;;  %v995_v52 = vadd.f32 %v987_v14, %v371_v50  ;;  %v1026_v54 = vmul.f32 %v1319_v53, %v1016_v43  ;;  %v1027_v56 = vmul.f32 %v1320_v55, %v1017_v41 }
 0x240   : > { %1008 = vst [vmem:[%s1964_s20 + $0x10] sm:$0xff] %v1000_v40  ;;  %v1002_v23 = vmul.f32 %v1321_v57, %v994_v19 }
 0x241   : > { %1009 = vst [vmem:[%s1964_s20 + $0x18] sm:$0xff] %v1001_v6  ;;  %v1003_v58 = vmul.f32 %v1322_v22, %v995_v52 }
 0x242   : > { %1012 = vst [vmem:[%s1964_s20 + $0x30] sm:$0xff] %v1004_v45 }
 0x243   : > { %1013 = vst [vmem:[%s1964_s20 + $0x38] sm:$0xff] %v1005_v36 }
 0x244   : > { %1028 = vst [vmem:[%s1964_s20 + $0x40] sm:$0xff] %v1020_v16 }
 0x245   : > { %1029 = vst [vmem:[%s1964_s20 + $0x48] sm:$0xff] %v1021_v17 }
 0x246   : > { %1030 = vst [vmem:[%s1964_s20 + $0x50] sm:$0xff] %v1022_v47 }
 0x247   : > { %1031 = vst [vmem:[%s1964_s20 + $0x58] sm:$0xff] %v1023_v49 }
 0x248   : > { %1032 = vst [vmem:[%s1964_s20 + $0x60] sm:$0xff] %v1024_v9 }
 0x249   : > { %1033 = vst [vmem:[%s1964_s20 + $0x68] sm:$0xff] %v1025_v8 }
 0x24a   : > { %1034 = vst [vmem:[%s1964_s20 + $0x70] sm:$0xff] %v1026_v54 }
 0x24b   : > { %1035 = vst [vmem:[%s1964_s20 + $0x78] sm:$0xff] %v1027_v56 }
 0x24c   : > { %1010 = vst [vmem:[%s1964_s20 + $0x20] sm:$0xff] %v1002_v23 }
 0x24d   : > { %1011 = vst [vmem:[%s1964_s20 + $0x28] sm:$0xff] %v1003_v58 }
 0x24e   : > { %1380 = shalt.err (!%p1377_p4)
}
 0x24f   : > { %s1473_s7 = smov 256  }
 0x250   : > { %1194 = dma.vmem_to_hbm [thread:$0]  (%p1549_p11), %s1050_s25, 2048, %s1052_s30, %s1037_s5, %s1473_s7, %s1473_s7, %s1448_s10  }
 0x251 PF: > { %s1066_s13 = sand.u32 1, %s1407_s15   ;;  %p2038_p7 = scmp.ge.s32.totalorder %s1419_s18, 2 }
 0x252   : > { %s1067_s20 = scalar_lea.sflag [#allocation5], %s1066_s13 }
 0x253   : > { %p1201_p5 = pnand %p2038_p7, %p1553_p12 }
 0x255   : > { %p1202_p8 = pneg %p1201_p5 }
 0x257   : > { %1402 = dma.done.wait (%p1202_p8), %s1067_s20, 2048  }
 0x258   : > { %1404 = vsyncadd (%p1202_p8), %s1067_s20, 4294965248  ;;  %p17_p10 = scmp.ge.s32.totalorder %s1524_s21, 4   ;;  %s2039_s15 = smov %s1411_s16 }
 0x259   : > { %s2040_s16 = smov %s1415_s17  ;;  %s2041_s17 = smov %s1536_s24 }
 0x25a   : > { %s2042_s18 = smov %s1524_s21  ;;  %19 = sbr.rel (!%p17_p10) target bundleno = 5 (0x5), region = 129 }
 0x25f   :  { %1073 = vsyncpa [#allocation4], 1 }
 0x260   :  { %1075 = vsyncpa [#allocation4 + $0x1], 1 }
 0x261   :  { %1076 = vsyncpa [#allocation5], 1 }
 0x262   :  { %1078 = vsyncpa [#allocation5 + $0x1], 1 }

</bundles_post_ra>
